<compile_context>
chip_gen: v5e
topology: v5e:2x2
jax: 0.10.0
libtpu: 0.0.40
codegen_flags: <defaults>
</compile_context>

<pallas_src>
import jax
import jax.numpy as jnp
from jax.experimental import pallas as pl
from jax.experimental.pallas import tpu as pltpu


def _round_up(x, m):
    return ((x + m - 1) // m) * m


def _pick_row_tile(n):
    """Largest friendly row tile that divides N (full block for tiny/irregular N)."""
    for t in (512, 256, 128):
        if n % t == 0:
            return t
    return n


def _supreme_yolo_kernel(p_ref, w1_ref, b1_ref, w2_ref, b2_ref, o_ref):
    """One (batch, row-tile) grid step; computes BOTH heads on the same patch tile.

    p_ref : (TN, K_pad)            bf16 lane-dense im2col patch rows
    w1_ref: (2, K_pad, Cmid_pad)   bf16 stacked conv3x3 weights (head 0 = golden)
    b1_ref: (2, 1, Cmid_pad)       f32
    w2_ref: (2, Cmid_pad, Cout_pad)bf16 stacked 1x1 head weights
    b2_ref: (2, 1, Cout_pad)       f32
    o_ref : (2, TN, Cout_pad)      already-permuted detections for both heads
    """
    p = p_ref[...]                                                     # (TN, K_pad) bf16
    for h in range(2):                                                 # unrolled: golden, yolo
        acc = jnp.dot(p, w1_ref[h],
                      preferred_element_type=jnp.float32)              # (TN, Cmid_pad) f32
        z = acc + b1_ref[h]                                            # bias in f32
        z = z * jax.nn.sigmoid(z)                                      # SiLU in f32
        # TODO(synk): on v6e/v7x (bf16 VPU/EUP) the bias+SiLU could run in bf16 to
        # halve vreg pressure; kept f32 so numerics match on v5e as well.
        out = jnp.dot(z.astype(jnp.bfloat16), w2_ref[h],
                      preferred_element_type=jnp.float32)               # (TN, Cout_pad)
        out = out + b2_ref[h]
        o_ref[h] = out.astype(o_ref.dtype)                              # lane-dense store


def _prep_head_params(params, K_pad, Cmid_pad, Cout_pad):
    """Reshape conv3x3 weight for im2col ((dy,dx,cin) rows) and zero-pad to lane width."""
    w1, b1, w2, b2 = params
    Cin, Cmid = w1.shape[2], w1.shape[3]
    Cout = w2.shape[1]
    K = 9 * Cin
    w1r = w1.reshape(K, Cmid)                                           # (dy, dx, cin) row order
    w1p = jnp.pad(w1r, ((0, K_pad - K), (0, Cmid_pad - Cmid))).astype(jnp.bfloat16)
    b1p = jnp.pad(b1, ((0, 0), (0, Cmid_pad - Cmid))).astype(jnp.float32)
    w2p = jnp.pad(w2, ((0, Cmid_pad - Cmid), (0, Cout_pad - Cout))).astype(jnp.bfloat16)
    b2p = jnp.pad(b2, ((0, 0), (0, Cout_pad - Cout))).astype(jnp.float32)
    return w1p, b1p, w2p, b2p


def _im2col_3x3(x_nchw, K_pad):
    """NCHW -> lane-dense (B, H*W, K_pad) bf16 patch for a SAME-padded 3x3 conv (XLA-side)."""
    B, Cin, H, W = x_nchw.shape
    x = jnp.transpose(x_nchw, (0, 2, 3, 1))                             # (B, H, W, Cin)
    xp = jnp.pad(x, ((0, 0), (1, 1), (1, 1), (0, 0)))                   # zero halo, built once
    taps = [xp[:, dy:dy + H, dx:dx + W, :]                              # (dy, dx, cin) order —
            for dy in range(3) for dx in range(3)]                      # keep in sync with w1r
    patch = jnp.concatenate(taps, axis=-1).reshape(B, H * W, 9 * Cin)
    patch = jnp.pad(patch, ((0, 0), (0, 0), (0, K_pad - 9 * Cin)))
    return patch.astype(jnp.bfloat16)


def supreme_yolo_forward(x_nchw, golden_params, yolo_params, out_dtype=None):
    """SupremeYOLO.forward: both heads in one fused pallas_call, concat order = (gold, yolo)."""
    B, Cin, H, W = x_nchw.shape
    Cmid = golden_params[0].shape[3]
    Cout = golden_params[2].shape[1]
    N = H * W
    K_pad = _round_up(9 * Cin, 128)
    Cmid_pad = _round_up(Cmid, 128)
    Cout_pad = _round_up(Cout, 128)
    TN = _pick_row_tile(N)
    out_dtype = x_nchw.dtype if out_dtype is None else out_dtype

    patch = _im2col_3x3(x_nchw, K_pad)                                  # (B, N, K_pad) bf16

    gp = _prep_head_params(golden_params, K_pad, Cmid_pad, Cout_pad)
    yp = _prep_head_params(yolo_params, K_pad, Cmid_pad, Cout_pad)
    # head 0 = golden, head 1 = yolo  (matches torch.cat((gold, yolo), dim=1))
    w1s, b1s, w2s, b2s = (jnp.stack([g, y]) for g, y in zip(gp, yp))

    out = pl.pallas_call(
        _supreme_yolo_kernel,
        out_shape=jax.ShapeDtypeStruct((B, 2, N, Cout_pad), out_dtype),
        grid_spec=pltpu.PrefetchScalarGridSpec(
            num_scalar_prefetch=0,
            grid=(B, N // TN),                                          # batch x spatial row tiles
            in_specs=[
                # patch tile: re-DMA'd per (b, r); weights below are grid-constant -> resident.
                pl.BlockSpec((None, TN, K_pad), lambda b, r: (b, r, 0)),
                pl.BlockSpec((2, K_pad, Cmid_pad), lambda b, r: (0, 0, 0)),
                pl.BlockSpec((2, 1, Cmid_pad), lambda b, r: (0, 0, 0)),
                pl.BlockSpec((2, Cmid_pad, Cout_pad), lambda b, r: (0, 0, 0)),
                pl.BlockSpec((2, 1, Cout_pad), lambda b, r: (0, 0, 0)),
            ],
            out_specs=pl.BlockSpec((None, 2, TN, Cout_pad), lambda b, r: (b, 0, r, 0)),
        ),
        compiler_params=pltpu.CompilerParams(
            dimension_semantics=("parallel", "parallel"),               # no cross-step carry
            vmem_limit_bytes=32 * 1024 * 1024,                          # fits v7x's 64 MiB VMEM
        ),
    )(patch, w1s, b1s, w2s, b2s)

    # (B, 2, N, Cout_pad) -> (B, 2N, Cout) IS the concat; drop lane padding.
    # TODO(synk): a fused downstream decode could consume the padded slab directly and
    # skip this HBM slice copy (and emit bf16) to cut output write amplification.
    return out.reshape(B, 2 * N, Cout_pad)[:, :, :Cout]


def make_head_params(key, Cin, Cmid, Cout):
    k1, k2, k3, k4 = jax.random.split(key, 4)
    w1 = jax.random.normal(k1, (3, 3, Cin, Cmid), jnp.float32) * 0.1
    b1 = jax.random.normal(k2, (1, Cmid), jnp.float32) * 0.05
    w2 = jax.random.normal(k3, (Cmid, Cout), jnp.float32) * 0.1
    b2 = jax.random.normal(k4, (1, Cout), jnp.float32) * 0.05
    return w1, b1, w2, b2


def _reference_head(x_nchw, w1, b1, w2, b2):
    """Pure-JAX f32 reference of the synthetic head (already-permuted detections)."""
    x = jnp.transpose(x_nchw, (0, 2, 3, 1))
    h = jax.lax.conv_general_dilated(
        x, w1, window_strides=(1, 1), padding="SAME",
        dimension_numbers=("NHWC", "HWIO", "NHWC"))
    h = h + b1[0]
    h = h * jax.nn.sigmoid(h)
    out = jnp.einsum("bhwc,cd->bhwd", h, w2) + b2[0]
    B, H, W, Cout = out.shape
    return out.reshape(B, H * W, Cout)


if __name__ == "__main__":
    B, Cin, H, W = 2, 4, 16, 16
    Cmid = 32
    num_classes = 16
    Cout = 4 + num_classes  # YOLO-style (box + classes)

    key = jax.random.PRNGKey(0)
    kx, kg, ky = jax.random.split(key, 3)

    x = jax.random.normal(kx, (B, Cin, H, W), jnp.float32)
    golden_params = make_head_params(kg, Cin, Cmid, Cout)
    yolo_params = make_head_params(ky, Cin, Cmid, Cout)

    det = supreme_yolo_forward(x, golden_params, yolo_params)
    det = jax.block_until_ready(det)

    # correctness check against pure-JAX f32 reference (bf16 MXU operands -> loosened tol)
    ref = jnp.concatenate(
        (_reference_head(x, *golden_params), _reference_head(x, *yolo_params)),
        axis=1,
    )
    assert det.shape == (B, 2 * H * W, Cout), det.shape
    assert jnp.allclose(det, ref, atol=3e-2, rtol=3e-2), \
        float(jnp.max(jnp.abs(det - ref)))

    print("KERNEL_OK")
</pallas_src>

<mosaic_0001>
module attributes {stable_mosaic.version = 11 : i64} {
  func.func @_supreme_yolo_kernel(%arg0: i32, %arg1: i32, %arg2: memref<1x256x128xbf16, #tpu.memory_space<vmem>>, %arg3: memref<2x128x128xbf16, #tpu.memory_space<vmem>>, %arg4: memref<2x1x128xf32, #tpu.memory_space<vmem>>, %arg5: memref<2x128x128xbf16, #tpu.memory_space<vmem>>, %arg6: memref<2x1x128xf32, #tpu.memory_space<vmem>>, %arg7: memref<1x2x256x128xf32, #tpu.memory_space<vmem>>) attributes {dimension_semantics = [#tpu.dimension_semantics<parallel>, #tpu.dimension_semantics<parallel>], iteration_bounds = array<i64: 2, 1>, scalar_prefetch = 0 : i64, scratch_operands = 0 : i64, tpu.core_type = #tpu.core_type<tc>, window_params = [{transform_indices = @transform_0, window_bounds = array<i64: 1, 256, 128>}, {pipeline_mode = #tpu.pipeline_mode<synchronous>, transform_indices = @transform_1, window_bounds = array<i64: 2, 128, 128>}, {pipeline_mode = #tpu.pipeline_mode<synchronous>, transform_indices = @transform_2, window_bounds = array<i64: 2, 1, 128>}, {pipeline_mode = #tpu.pipeline_mode<synchronous>, transform_indices = @transform_3, window_bounds = array<i64: 2, 128, 128>}, {pipeline_mode = #tpu.pipeline_mode<synchronous>, transform_indices = @transform_4, window_bounds = array<i64: 2, 1, 128>}, {transform_indices = @transform_5, window_bounds = array<i64: 1, 2, 256, 128>}]} {
    %c0 = arith.constant 0 : index
    %c0_0 = arith.constant 0 : index
    %c0_1 = arith.constant 0 : index
    %0 = vector.load %arg2[%c0, %c0_0, %c0_1] : memref<1x256x128xbf16, #tpu.memory_space<vmem>>, vector<1x256x128xbf16>
    %1 = vector.shape_cast %0 : vector<1x256x128xbf16> to vector<256x128xbf16>
    %c0_2 = arith.constant 0 : index
    %c0_3 = arith.constant 0 : index
    %c0_4 = arith.constant 0 : index
    %2 = vector.load %arg3[%c0_2, %c0_3, %c0_4] : memref<2x128x128xbf16, #tpu.memory_space<vmem>>, vector<1x128x128xbf16>
    %3 = vector.shape_cast %2 : vector<1x128x128xbf16> to vector<128x128xbf16>
    %cst = arith.constant dense<0.000000e+00> : vector<256x128xf32>
    %4 = tpu.matmul %1, %3, %cst {dimension_numbers = #tpu.dot_dimension_numbers<[1], [0], [0], [1], [0, 0, 1, 1], [], []>} : vector<256x128xbf16>, vector<128x128xbf16>, vector<256x128xf32> -> vector<256x128xf32>
    %c0_5 = arith.constant 0 : index
    %c0_6 = arith.constant 0 : index
    %c0_7 = arith.constant 0 : index
    %5 = vector.load %arg4[%c0_5, %c0_6, %c0_7] : memref<2x1x128xf32, #tpu.memory_space<vmem>>, vector<1x1x128xf32>
    %6 = vector.shape_cast %5 : vector<1x1x128xf32> to vector<1x128xf32>
    %7 = vector.broadcast %6 : vector<1x128xf32> to vector<256x128xf32>
    %8 = arith.addf %4, %7 : vector<256x128xf32>
    %9 = arith.negf %8 : vector<256x128xf32>
    %10 = math.exp %9 : vector<256x128xf32>
    %cst_8 = arith.constant 1.000000e+00 : f32
    %11 = vector.broadcast %cst_8 : f32 to vector<256x128xf32>
    %12 = arith.addf %11, %10 : vector<256x128xf32>
    %13 = arith.divf %11, %12 : vector<256x128xf32>
    %14 = arith.mulf %8, %13 : vector<256x128xf32>
    %15 = arith.truncf %14 : vector<256x128xf32> to vector<256x128xbf16>
    %c0_9 = arith.constant 0 : index
    %c0_10 = arith.constant 0 : index
    %c0_11 = arith.constant 0 : index
    %16 = vector.load %arg5[%c0_9, %c0_10, %c0_11] : memref<2x128x128xbf16, #tpu.memory_space<vmem>>, vector<1x128x128xbf16>
    %17 = vector.shape_cast %16 : vector<1x128x128xbf16> to vector<128x128xbf16>
    %cst_12 = arith.constant dense<0.000000e+00> : vector<256x128xf32>
    %18 = tpu.matmul %15, %17, %cst_12 {dimension_numbers = #tpu.dot_dimension_numbers<[1], [0], [0], [1], [0, 0, 1, 1], [], []>} : vector<256x128xbf16>, vector<128x128xbf16>, vector<256x128xf32> -> vector<256x128xf32>
    %c0_13 = arith.constant 0 : index
    %c0_14 = arith.constant 0 : index
    %c0_15 = arith.constant 0 : index
    %19 = vector.load %arg6[%c0_13, %c0_14, %c0_15] : memref<2x1x128xf32, #tpu.memory_space<vmem>>, vector<1x1x128xf32>
    %20 = vector.shape_cast %19 : vector<1x1x128xf32> to vector<1x128xf32>
    %21 = vector.broadcast %20 : vector<1x128xf32> to vector<256x128xf32>
    %22 = arith.addf %18, %21 : vector<256x128xf32>
    %c0_16 = arith.constant 0 : index
    %c0_17 = arith.constant 0 : index
    %c0_18 = arith.constant 0 : index
    %c0_19 = arith.constant 0 : index
    %23 = vector.load %arg7[%c0_16, %c0_17, %c0_18, %c0_19] : memref<1x2x256x128xf32, #tpu.memory_space<vmem>>, vector<1x1x256x128xf32>
    %24 = vector.shape_cast %23 : vector<1x1x256x128xf32> to vector<256x128xf32>
    %25 = vector.shape_cast %22 : vector<256x128xf32> to vector<1x1x256x128xf32>
    tpu.vector_store %arg7[%c0_16, %c0_17, %c0_18, %c0_19], %25 {strides = array<i32>} : memref<1x2x256x128xf32, #tpu.memory_space<vmem>>, vector<1x1x256x128xf32>,
    %c1 = arith.constant 1 : index
    %c0_20 = arith.constant 0 : index
    %c0_21 = arith.constant 0 : index
    %26 = vector.load %arg3[%c1, %c0_20, %c0_21] : memref<2x128x128xbf16, #tpu.memory_space<vmem>>, vector<1x128x128xbf16>
    %27 = vector.shape_cast %26 : vector<1x128x128xbf16> to vector<128x128xbf16>
    %cst_22 = arith.constant dense<0.000000e+00> : vector<256x128xf32>
    %28 = tpu.matmul %1, %27, %cst_22 {dimension_numbers = #tpu.dot_dimension_numbers<[1], [0], [0], [1], [0, 0, 1, 1], [], []>} : vector<256x128xbf16>, vector<128x128xbf16>, vector<256x128xf32> -> vector<256x128xf32>
    %c1_23 = arith.constant 1 : index
    %c0_24 = arith.constant 0 : index
    %c0_25 = arith.constant 0 : index
    %29 = vector.load %arg4[%c1_23, %c0_24, %c0_25] : memref<2x1x128xf32, #tpu.memory_space<vmem>>, vector<1x1x128xf32>
    %30 = vector.shape_cast %29 : vector<1x1x128xf32> to vector<1x128xf32>
    %31 = vector.broadcast %30 : vector<1x128xf32> to vector<256x128xf32>
    %32 = arith.addf %28, %31 : vector<256x128xf32>
    %33 = arith.negf %32 : vector<256x128xf32>
    %34 = math.exp %33 : vector<256x128xf32>
    %cst_26 = arith.constant 1.000000e+00 : f32
    %35 = vector.broadcast %cst_26 : f32 to vector<256x128xf32>
    %36 = arith.addf %35, %34 : vector<256x128xf32>
    %37 = arith.divf %35, %36 : vector<256x128xf32>
    %38 = arith.mulf %32, %37 : vector<256x128xf32>
    %39 = arith.truncf %38 : vector<256x128xf32> to vector<256x128xbf16>
    %c1_27 = arith.constant 1 : index
    %c0_28 = arith.constant 0 : index
    %c0_29 = arith.constant 0 : index
    %40 = vector.load %arg5[%c1_27, %c0_28, %c0_29] : memref<2x128x128xbf16, #tpu.memory_space<vmem>>, vector<1x128x128xbf16>
    %41 = vector.shape_cast %40 : vector<1x128x128xbf16> to vector<128x128xbf16>
    %cst_30 = arith.constant dense<0.000000e+00> : vector<256x128xf32>
    %42 = tpu.matmul %39, %41, %cst_30 {dimension_numbers = #tpu.dot_dimension_numbers<[1], [0], [0], [1], [0, 0, 1, 1], [], []>} : vector<256x128xbf16>, vector<128x128xbf16>, vector<256x128xf32> -> vector<256x128xf32>
    %c1_31 = arith.constant 1 : index
    %c0_32 = arith.constant 0 : index
    %c0_33 = arith.constant 0 : index
    %43 = vector.load %arg6[%c1_31, %c0_32, %c0_33] : memref<2x1x128xf32, #tpu.memory_space<vmem>>, vector<1x1x128xf32>
    %44 = vector.shape_cast %43 : vector<1x1x128xf32> to vector<1x128xf32>
    %45 = vector.broadcast %44 : vector<1x128xf32> to vector<256x128xf32>
    %46 = arith.addf %42, %45 : vector<256x128xf32>
    %c0_34 = arith.constant 0 : index
    %c1_35 = arith.constant 1 : index
    %c0_36 = arith.constant 0 : index
    %c0_37 = arith.constant 0 : index
    %47 = vector.load %arg7[%c0_34, %c1_35, %c0_36, %c0_37] : memref<1x2x256x128xf32, #tpu.memory_space<vmem>>, vector<1x1x256x128xf32>
    %48 = vector.shape_cast %47 : vector<1x1x256x128xf32> to vector<256x128xf32>
    %49 = vector.shape_cast %46 : vector<256x128xf32> to vector<1x1x256x128xf32>
    tpu.vector_store %arg7[%c0_34, %c1_35, %c0_36, %c0_37], %49 {strides = array<i32>} : memref<1x2x256x128xf32, #tpu.memory_space<vmem>>, vector<1x1x256x128xf32>,
    return
  }
  func.func @transform_0(%arg0: i32, %arg1: i32) -> (i32, i32, i32) {
    %c0_i32 = arith.constant 0 : i32
    %c0_i32_0 = arith.constant 0 : i32
    return %arg0, %arg1, %c0_i32 : i32, i32, i32
  }
  func.func @transform_1(%arg0: i32, %arg1: i32) -> (i32, i32, i32) {
    %c0_i32 = arith.constant 0 : i32
    %c0_i32_0 = arith.constant 0 : i32
    %c0_i32_1 = arith.constant 0 : i32
    %c0_i32_2 = arith.constant 0 : i32
    return %c0_i32, %c0_i32_0, %c0_i32_1 : i32, i32, i32
  }
  func.func @transform_2(%arg0: i32, %arg1: i32) -> (i32, i32, i32) {
    %c0_i32 = arith.constant 0 : i32
    %c0_i32_0 = arith.constant 0 : i32
    %c0_i32_1 = arith.constant 0 : i32
    %c0_i32_2 = arith.constant 0 : i32
    return %c0_i32, %c0_i32_0, %c0_i32_1 : i32, i32, i32
  }
  func.func @transform_3(%arg0: i32, %arg1: i32) -> (i32, i32, i32) {
    %c0_i32 = arith.constant 0 : i32
    %c0_i32_0 = arith.constant 0 : i32
    %c0_i32_1 = arith.constant 0 : i32
    %c0_i32_2 = arith.constant 0 : i32
    return %c0_i32, %c0_i32_0, %c0_i32_1 : i32, i32, i32
  }
  func.func @transform_4(%arg0: i32, %arg1: i32) -> (i32, i32, i32) {
    %c0_i32 = arith.constant 0 : i32
    %c0_i32_0 = arith.constant 0 : i32
    %c0_i32_1 = arith.constant 0 : i32
    %c0_i32_2 = arith.constant 0 : i32
    return %c0_i32, %c0_i32_0, %c0_i32_1 : i32, i32, i32
  }
  func.func @transform_5(%arg0: i32, %arg1: i32) -> (i32, i32, i32, i32) {
    %c0_i32 = arith.constant 0 : i32
    %c0_i32_0 = arith.constant 0 : i32
    %c0_i32_1 = arith.constant 0 : i32
    return %arg0, %c0_i32, %arg1, %c0_i32_0 : i32, i32, i32, i32
  }
}

</mosaic_0001>

<bundles_post_ra>
// kernel: tpu_custom_call.1
= control target key start
LH: loop header
LB: loop body
LE: loop exit
PB: predicated region body
PF: predicated region fallthrough
CT: control target
= control target key end

     0   :  { %s5905_s0 = inlined_call_operand.hbm [shape: bf16[2,256,128], index: 0, kind: input, shape index: {}]   ;;  %s5906_s1 = inlined_call_operand.hbm [shape: bf16[2,128,128], index: 1, kind: input, shape index: {}]   ;;  %s5907_s2 = inlined_call_operand.hbm [shape: f32[2,1,128], index: 2, kind: input, shape index: {}]   ;;  %s5908_s3 = inlined_call_operand.hbm [shape: bf16[2,128,128], index: 3, kind: input, shape index: {}]   ;;  %s5909_s4 = inlined_call_operand.vmem [shape: f32[2,1,128], index: 4, kind: input, shape index: {}]   ;;  %s5910_s5 = inlined_call_operand.hbm [shape: f32[2,2,256,128], index: 5, kind: output, shape index: {}]  }
   0x1   :  { %5913 = sst [smem:[#allocation15_spill]] %s5906_s1 }
   0x2   :  { %5914 = sst [smem:[#allocation16_spill]] %s5907_s2 }
   0x3   :  { %5915 = sst [smem:[#allocation17_spill]] %s5908_s3 }
   0x4   :  { %10 = vsyncpa [#allocation3], 0 }
   0x5   :  { %12 = vsyncpa [#allocation3 + $0x1], 0 }
   0x6   :  { %13 = vsyncpa [#allocation6], 0 }
   0x7   :  { %14 = vsyncpa [#allocation9], 0 }
   0x8   :  { %15 = vsyncpa [#allocation4], 0 }
   0x9   :  { %17 = vsyncpa [#allocation4 + $0x1], 0  ;;  %s3562_s18 = smov 0   ;;  %s3564_s19 = smov 0  }
   0xa   :  { %s3566_s20 = smov 0   ;;  %s3568_s21 = smov 0  }
   0xb   :  { %s3570_s22 = smov 0   ;;  %s3572_s23 = smov 0  }
   0xc LB: > { %s2586_s24 = sadd.s32 4294967295, %s3521_s23   ;;  %s2587_s25 = sadd.s32 4294967294, %s3521_s23   ;;  %s3521_s23 = sphi %s3572_s23, %s23_s23   ;;  %s3517_s22 = sphi %s3570_s22, %s6113_s22   ;;  %s3513_s21 = sphi %s3568_s21, %s6112_s21   ;;  %s3509_s20 = sphi %s3566_s20, %s6111_s20   ;;  %s3505_s19 = sphi %s3564_s19, %s6110_s19   ;;  %s3501_s18 = sphi %s3562_s18, %s6109_s18  }
   0xd   : > { %p57_p0 = scmp.ne.s32.totalorder %s3505_s19, %s3501_s18  ;;  %p3596_p1 = scmp.eq.s32.totalorder %s2586_s24, 0 }
   0xe   : > { %p3600_p2 = scmp.eq.s32.totalorder %s2586_s24, 1  ;;  %p173_p3 = scmp.eq.s32.totalorder %s2587_s25, 1 }
   0xf   : > { %p3606_p4 = por %p3596_p1, %p57_p0  ;;  %p2588_p5 = scmp.ge.s32.totalorder %s3521_s23, 1 }
  0x10   : > { %p3611_p6 = por %p173_p3, %p57_p0  ;;  %p180_p7 = scmp.lt.s32.totalorder %s3521_s23, 3 }
  0x11   : > { %s5920_s1 = sld [smem:[#allocation15_spill]]  ;;  %s3523_s9 = smov [#allocation5]  }
  0x12   : > { %p3619_p8 = pnand %p2588_p5, %p180_p7  ;;  %s193_s10 = sshll.u32 %s3523_s9, 4  ;;  %s194_s10 = int_to_ptr.vmem [resolvable:$true] %s193_s10 }
  0x13   : > { %p2592_p11 = scmp.ge.s32.totalorder %s3521_s23, 2  ;;  %s5923_s2 = sld [smem:[#allocation16_spill]] }
  0x14   : > { %p2962_p9 = pneg %p3619_p8  ;;  %s5911_s15 = smov 64  }
  0x15   : > { %s5912_s16 = smov 4   ;;  %s3526_s17 = smov [#allocation7]  }
  0x16   : > { %p3627_p10 = pnand %p2962_p9, %p3596_p1  ;;  %s207_s24 = sshll.u32 %s3526_s17, 4  ;;  %s208_s24 = int_to_ptr.vmem [resolvable:$true] %s207_s24 }
  0x17   : > { %s191_s7 = sshll.u32 %s5920_s1, 4  ;;  %s3527_s25 = smov 16   ;;  %s192_s7 = int_to_ptr.hbm [resolvable:$true] %s191_s7 }
  0x18   : > { %2965 = dma.hbm_to_vmem [thread:$0]  (!%p3627_p10), %s192_s7, 2048, %s194_s10, [#allocation6], %s5911_s15, %s5911_s15, %s5912_s16  }
  0x19   : > { %s205_s14 = sshll.u32 %s5923_s2, 4  ;;  %s3528_s30 = smov 1   ;;  %s206_s14 = int_to_ptr.hbm [resolvable:$true] %s205_s14 }
  0x1a   : > { %2968 = dma.hbm_to_vmem [thread:$0]  (!%p3627_p10), %s206_s14, 32, %s208_s24, [#allocation6], %s3527_s25, %s3527_s25, %s3528_s30  }
  0x1b   : > { %s5924_s3 = sld [smem:[#allocation17_spill]]  ;;  %s3529_s13 = smov [#allocation8]  }
  0x1c   : > { %s221_s1 = sshll.u32 %s3529_s13, 4  ;;  %s44_s7 = sadd.s32 1, %s3509_s20  ;;  %s222_s1 = int_to_ptr.vmem [resolvable:$true] %s221_s1 }
  0x1d   : > { %s35_s10 = sadd.s32 1, %s3517_s22  ;;  %p51_p12 = scmp.ne.s32.totalorder %s3509_s20, %s3505_s19 }
  0x1e   : > { %p37_p13 = scmp.ge.s32.totalorder %s35_s10, 2  ;;  %p52_p0 = scmp.eq.s32.totalorder %s3521_s23, 0 }
  0x1f   : > { %p3657_p3 = por %p3600_p2, %p51_p12  ;;  %p2983_p5 = scmp.lt.s32.totalorder %s3521_s23, 2 }
  0x20   : > { %s6115_s10 = smov (%p37_p13, %s35_s10), 0  ;;  %p3664_p7 = por %p52_p0, %p51_p12 }
  0x21   : > { %s219_s12 = sshll.u32 %s5924_s3, 4  ;;  %s39_s17 = ssub.s32 %s3517_s22, %s6115_s10  ;;  %s220_s12 = int_to_ptr.hbm [resolvable:$true] %s219_s12 }
  0x22   : > { %2971 = dma.hbm_to_vmem [thread:$0]  (!%p3627_p10), %s220_s12, 2048, %s222_s1, [#allocation9], %s5911_s15, %s5911_s15, %s5912_s16  }
  0x23   : > { %s238_s1 = sand.u32 1, %s3509_s20   ;;  %p42_p9 = scmp.eq.s32.totalorder %s39_s17, 0 }
  0x24   : > { %s2593_s24 = sshll.u32 %s238_s1, 7  ;;  %s2896_s25 = sshll.u32 %s3517_s22, 7 }
  0x25   : > { %s3673_s27 = scalar_select %p42_p9, %s3509_s20, %s44_s7  }
  0x26   : > { %s249_s9 = scalar_lea.hbm %s5905_s0, %s2896_s25  ;;  %s242_s12 = scalar_lea.vmem [#allocation2], %s2593_s24 }
  0x27   : > { %s252_s13 = sshll.u32 %s242_s12, 4  ;;  %s250_s15 = sshll.u32 %s249_s9, 4  ;;  %s253_s13 = int_to_ptr.vmem [resolvable:$true] %s252_s13  ;;  %s251_s15 = int_to_ptr.hbm [resolvable:$true] %s250_s15 }
  0x28   : > { %p2973_p2 = pnand %p2983_p5, %p3664_p7  ;;  %s239_s16 = scalar_lea.sflag [#allocation3], %s238_s1 }
  0x29   : > { %s5927_s2 = smov 4   ;;  %s5928_s3 = smov 64  }
  0x2a   : > { %2975 = dma.hbm_to_vmem [thread:$0]  (!%p2973_p2), %s251_s15, 2048, %s253_s13, %s239_s16, %s5928_s3, %s5928_s3, %s5927_s2  }
  0x2b   : > { %264 = sbr.rel (%p3619_p8) target bundleno = 691 (0x2b3), region = 40  ;;  %s3688_s7 = sand.u32 (!%p3619_p8), 1, %s3505_s19  }
  0x2c   : > { %s2597_s17 = sshll.u32 (!%p3619_p8), %s3688_s7, 7  ;;  %s267_s24 = scalar_lea.sflag (!%p3619_p8), [#allocation3], %s3688_s7 }
  0x2d   : > { %s3692_s25 = scalar_lea.vmem (!%p3619_p8), [#allocation2], %s2597_s17 }
  0x30   : > { %3484 = dma.done.wait (%p3606_p4), %s267_s24, 2048  }
  0x31   : > { %3486 = vsyncadd (%p3606_p4), %s267_s24, 4294965248 }
  0x32   : > { %3488 = dma.done.wait (%p3596_p1), [#allocation6], 2080  }
  0x33   : > { %3490 = vsyncadd (%p3596_p1), [#allocation6], 4294965216 }
  0x34   : > { %3492 = dma.done.wait (%p3596_p1), [#allocation9], 2048  }
  0x35   : > { %3494 = vsyncadd (%p3596_p1), [#allocation9], 4294965248  ;;  %v2920_v0 = vld [vmem:[#allocation5 + $0x38] sm:$0xff]  ;;  %v2919_v2 = vld [vmem:[#allocation5 + $0x30] sm:$0xff]  ;;  %s2601_s2 = sshll.u32 %s3688_s7, 9  ;;  %s2945_s6 = sshll.u32 %s3513_s21, 9 }
  0x36   : > { %v2936_v1 = vld [vmem:[#allocation5 + $0x78] sm:$0xff]  ;;  %511 = vmatpush.bf16.msra.mxu0 %v2920_v0  ;;  %v2935_v3 = vld [vmem:[#allocation5 + $0x70] sm:$0xff]  ;;  %v2918_v4 = vld [vmem:[#allocation5 + $0x28] sm:$0xff]  ;;  %s4884_s28 = scalar_lea.vmem [#allocation10], %s2601_s2  ;;  %s2466_s13 = scalar_lea.hbm %s5910_s5, %s2945_s6 }
  0x37   : > { %1515 = vmatpush.bf16.msra.mxu2 %v2936_v1  ;;  %v2934_v5 = vld [vmem:[#allocation5 + $0x68] sm:$0xff]  ;;  %v2917_v6 = vld [vmem:[#allocation5 + $0x20] sm:$0xff]  ;;  %v2916_v8 = vld [vmem:[#allocation5 + $0x18] sm:$0xff]  ;;  %s2467_s17 = sshll.u32 %s4884_s28, 4  ;;  %s2469_s24 = sshll.u32 %s2466_s13, 4  ;;  %s2468_s17 = int_to_ptr.vmem [resolvable:$true] %s2467_s17  ;;  %s2470_s24 = int_to_ptr.hbm [resolvable:$true] %s2469_s24 }
  0x38   : > { %v2933_v7 = vld [vmem:[#allocation5 + $0x60] sm:$0xff]  ;;  %v2932_v9 = vld [vmem:[#allocation5 + $0x58] sm:$0xff]  ;;  %v2915_v10 = vld [vmem:[#allocation5 + $0x10] sm:$0xff]  ;;  %s3445_s2 = sshra.s32 %s2470_s24, 4  ;;  %s3451_s8 = scalar_lea.hbm %s5910_s5, 1024  ;;  %s3446_s2 = int_to_ptr.hbm [resolvable:$true] %s3445_s2 }
  0x39   : > { %v2931_v11 = vld [vmem:[#allocation5 + $0x50] sm:$0xff]  ;;  %v2914_v12 = vld [vmem:[#allocation5 + $0x8] sm:$0xff]  ;;  %v2913_v14 = vld [vmem:[#allocation5] sm:$0xff]  ;;  %s3447_s21 = scalar_lea.hbm %s3446_s2, 512  ;;  %p3452_p10 = scmp.lt.s32.totalorder %s3446_s2, %s5910_s5 }
  0x3a   : > { %512 = vmatpush.bf16.msra.mxu0 %v2919_v2  ;;  %v2930_v13 = vld [vmem:[#allocation5 + $0x48] sm:$0xff]  ;;  %v2929_v15 = vld [vmem:[#allocation5 + $0x40] sm:$0xff]  ;;  %v2899_v18 = vld [vmem:[%s3692_s25 + $0x10] sm:$0xff]  ;;  %p3448_p1 = scmp.ne.s32.totalorder %s3446_s2, %s3447_s21  ;;  %p3453_p12 = scmp.lt.s32.totalorder %s3451_s8, %s3447_s21 }
  0x3b   : > { %1516 = vmatpush.bf16.msra.mxu2 %v2935_v3  ;;  %v2897_v16 = vld [vmem:[%s3692_s25] sm:$0xff]  ;;  %v2898_v17 = vld [vmem:[%s3692_s25 + $0x8] sm:$0xff]  ;;  %v2900_v19 = vld [vmem:[%s3692_s25 + $0x18] sm:$0xff] }
  0x3c   : > { %v2901_v20 = vld [vmem:[%s3692_s25 + $0x20] sm:$0xff]  ;;  %v2902_v21 = vld [vmem:[%s3692_s25 + $0x28] sm:$0xff]  ;;  %v2903_v22 = vld [vmem:[%s3692_s25 + $0x30] sm:$0xff]  ;;  %p3449_p4 = pnand %p3448_p1, %p3657_p3  ;;  %p3454_p13 = por %p3453_p12, %p3452_p10 }
  0x3d   : > { %v2928_v23 = vld [vmem:[#allocation8 + $0x38] sm:$0xff]  ;;  %v2927_v25 = vld [vmem:[#allocation8 + $0x30] sm:$0xff]  ;;  %v2926_v27 = vld [vmem:[#allocation8 + $0x28] sm:$0xff] }
  0x3e   : > { %513 = vmatpush.bf16.msra.mxu0 %v2918_v4  ;;  %1324 = vmatpush.bf16.msra.mxu1 %v2928_v23  ;;  %v2904_v24 = vld [vmem:[%s3692_s25 + $0x38] sm:$0xff]  ;;  %v2925_v29 = vld [vmem:[#allocation8 + $0x20] sm:$0xff]  ;;  %v2942_v30 = vld [vmem:[#allocation8 + $0x68] sm:$0xff]  ;;  %p3450_p8 = pneg %p3449_p4 }
  0x3f   : > { %1517 = vmatpush.bf16.msra.mxu2 %v2934_v5  ;;  %v2944_v26 = vld [vmem:[#allocation8 + $0x78] sm:$0xff]  ;;  %v2943_v28 = vld [vmem:[#allocation8 + $0x70] sm:$0xff]  ;;  %v2941_v34 = vld [vmem:[#allocation8 + $0x60] sm:$0xff] }
  0x40   : > { %2330 = vmatpush.bf16.msra.mxu3 %v2944_v26  ;;  %v2924_v31 = vld [vmem:[#allocation8 + $0x18] sm:$0xff]  ;;  %v2923_v37 = vld [vmem:[#allocation8 + $0x10] sm:$0xff]  ;;  %v2922_v41 = vld [vmem:[#allocation8 + $0x8] sm:$0xff]  ;;  %p3455_p0 = pnand %p3454_p13, %p3450_p8 }
  0x41   : > { %v3714_v32 = vld [vmem:[#allocation7] ss:$0 sm:$0xff]  ;;  %v3721_v39 = vld [vmem:[#allocation7 + $0x1] ss:$0 sm:$0xff]  ;;  %v2939_v44 = vld [vmem:[#allocation8 + $0x50] sm:$0xff] }
  0x42   : > { %514 = vmatpush.bf16.msra.mxu0 %v2917_v6  ;;  %1325 = vmatpush.bf16.msra.mxu1 %v2927_v25  ;;  %v2905_v33 = vld [vmem:[%s3692_s25 + $0x40] sm:$0xff]  ;;  %v2938_v51 = vld [vmem:[#allocation8 + $0x48] sm:$0xff] }
  0x43   : > { %1518 = vmatpush.bf16.msra.mxu2 %v2933_v7  ;;  %v2940_v40 = vld [vmem:[#allocation8 + $0x58] sm:$0xff]  ;;  %v2921_v48 = vld [vmem:[#allocation8] sm:$0xff] }
  0x44   : > { %2331 = vmatpush.bf16.msra.mxu3 %v2943_v28  ;;  %v2906_v55 = vld [vmem:[%s3692_s25 + $0x48] sm:$0xff] }
  0x45   : > { %v2937_v61 = vld [vmem:[#allocation8 + $0x40] sm:$0xff] }
  0x46   : > { %515 = vmatpush.bf16.msra.mxu0 %v2916_v8  ;;  %1326 = vmatpush.bf16.msra.mxu1 %v2926_v27 }
  0x47   : > { %1519 = vmatpush.bf16.msra.mxu2 %v2932_v9 }
  0x48   : > { %2332 = vmatpush.bf16.msra.mxu3 %v2942_v30 }
  0x4a   : > { %516 = vmatpush.bf16.msra.mxu0 %v2915_v10  ;;  %1327 = vmatpush.bf16.msra.mxu1 %v2925_v29 }
  0x4b   : > { %1520 = vmatpush.bf16.msra.mxu2 %v2931_v11 }
  0x4c   : > { %2333 = vmatpush.bf16.msra.mxu3 %v2941_v34 }
  0x4e   : > { %517 = vmatpush.bf16.msra.mxu0 %v2914_v12  ;;  %1328 = vmatpush.bf16.msra.mxu1 %v2924_v31 }
  0x4f   : > { %1521 = vmatpush.bf16.msra.mxu2 %v2930_v13 }
  0x50   : > { %2334 = vmatpush.bf16.msra.mxu3 %v2940_v40 }
  0x52   : > { %518 = vmatpush.bf16.msra.mxu0 %v2913_v14  ;;  %1329 = vmatpush.bf16.msra.mxu1 %v2923_v37 }
  0x53   : > { %1522 = vmatpush.bf16.msra.mxu2 %v2929_v15 }
  0x54   : > { %2335 = vmatpush.bf16.msra.mxu3 %v2939_v44 }
  0x55   : > { %519 = vmatmul.bf16.vlgmr.msra.gmra.mxu0 %v2897_v16 }
  0x56   : > { %1523 = vmatmul.bf16.vlgmr.msra.gmra.mxu2 %v2897_v16  ;;  %1330 = vmatpush.bf16.msra.mxu1 %v2922_v41 }
  0x58   : > { %2336 = vmatpush.bf16.msra.mxu3 %v2938_v51 }
  0x5a   : > { %1331 = vmatpush.bf16.msra.mxu1 %v2921_v48 }
  0x5c   : > { %2337 = vmatpush.bf16.msra.mxu3 %v2937_v61 }
  0x65   : > { %524 = vmatmul.bf16.gmra.mxu0 %v2898_v17 }
  0x66   : > { %1528 = vmatmul.bf16.gmra.mxu2 %v2898_v17 }
  0x75   : > { %529 = vmatmul.bf16.gmra.mxu0 %v2899_v18 }
  0x76   : > { %1533 = vmatmul.bf16.gmra.mxu2 %v2899_v18 }
  0x85   : > { %534 = vmatmul.bf16.gmra.mxu0 %v2900_v19 }
  0x86   : > { %1538 = vmatmul.bf16.gmra.mxu2 %v2900_v19 }
  0x95   : > { %539 = vmatmul.bf16.gmra.mxu0 %v2901_v20 }
  0x96   : > { %1543 = vmatmul.bf16.gmra.mxu2 %v2901_v20  ;;  %v2907_v20 = vld [vmem:[%s3692_s25 + $0x50] sm:$0xff] }
  0xa5   : > { %544 = vmatmul.bf16.gmra.mxu0 %v2902_v21 }
  0xa6   : > { %1548 = vmatmul.bf16.gmra.mxu2 %v2902_v21 }
  0xb5   : > { %549 = vmatmul.bf16.gmra.mxu0 %v2903_v22 }
  0xb6   : > { %1553 = vmatmul.bf16.gmra.mxu2 %v2903_v22 }
  0xc5   : > { %554 = vmatmul.bf16.gmra.mxu0 %v2904_v24 }
  0xc6   : > { %1558 = vmatmul.bf16.gmra.mxu2 %v2904_v24 }
  0xd2   : > { %v520_v35 = vpop.f32.mrf.mxu0 }
  0xd3   : > { %v3718_v36 = vadd.f32 %v3714_v32, %v520_v35 }
  0xd5   : > { %v2698_v38 = vmul.f32 -1.442695, %v3718_v36  ;;  %559 = vmatmul.bf16.gmra.mxu0 %v2905_v33 }
  0xd6   : > { %1563 = vmatmul.bf16.gmra.mxu2 %v2905_v33 }
  0xd7   : > { %3049 = vpow2.f32 %v2698_v38 }
  0xd9   : > { %v1524_v42 = vpop.f32.mrf.mxu2 }
  0xda   : > { %v3724_v43 = vadd.f32 %v3721_v39, %v1524_v42  ;;  %v522_v45 = vpop.f32.mrf.mxu0 }
  0xdb   : > { %v3728_v47 = vadd.f32 %v3714_v32, %v522_v45 }
  0xdc   : > { %v2794_v46 = vmul.f32 -1.442695, %v3724_v43 }
  0xdd   : > { %v3050_v49 = vpop.eup %3049  ;;  %v2699_v50 = vmul.f32 -1.442695, %v3728_v47 }
  0xde   : > { %3051 = vpow2.f32 %v2794_v46  ;;  %v3731_v52 = vadd.f32 1.0, %v3050_v49 }
  0xdf   : > { %3053 = vpow2.f32 %v2699_v50 }
  0xe0   : > { %3055 = vrcp.f32 %v3731_v52  ;;  %vm733_vm0 = vweird.f32 %v3731_v52  ;;  %v737_v19 = vand.u32 2147483647, %v3731_v52  ;;  %v739_v21 = vand.u32 2147483648, %v3731_v52 }
  0xe1   : > { %v1526_v53 = vpop.f32.mrf.mxu2 }
  0xe2   : > { %v3735_v54 = vadd.f32 %v3721_v39, %v1526_v53  ;;  %v525_v56 = vpop.f32.mrf.mxu0  ;;  %vm3799_vm3 = vcmp.eq.f32.partialorder %v737_v19, 8.507059e+37  ;;  %v740_v38 = vor.u32 1.1754944e-38, %v739_v21 }
  0xe3   : > { %v3740_v59 = vadd.f32 %v3714_v32, %v525_v56 }
  0xe4   : > { %v3052_v57 = vpop.eup %3051  ;;  %v2795_v58 = vmul.f32 -1.442695, %v3735_v54 }
  0xe5   : > { %v3742_v60 = vadd.f32 1.0, %v3052_v57  ;;  %v3054_v62 = vpop.eup %3053  ;;  %v2700_v63 = vmul.f32 -1.442695, %v3740_v59  ;;  %564 = vmatmul.bf16.gmra.mxu0 %v2906_v55 }
  0xe6   : > { %3057 = vpow2.f32 %v2795_v58  ;;  %1568 = vmatmul.bf16.gmra.mxu2 %v2906_v55  ;;  %v3745_v0 = vpop.eup %3055  ;;  %v3750_v2 = vadd.f32 1.0, %v3054_v62 }
  0xe7   : > { %3059 = vrcp.f32 %v3742_v60  ;;  %v729_v1 = vmul.f32 %v3745_v0, %v3731_v52  ;;  %vm734_vm1 = vweird.f32 %v3745_v0  ;;  %vm1737_vm4 = vweird.f32 %v3742_v60 }
  0xe8   : > { %3061 = vpow2.f32 %v2700_v63  ;;  %vm3792_vm2 = vmor %vm733_vm0, %vm734_vm1  ;;  %v754_v37 = vand.u32 2147483648, %v3750_v2  ;;  %vm748_vm5 = vweird.f32 %v3750_v2  ;;  %v752_v52 = vand.u32 2147483647, %v3750_v2 }
  0xe9   : > { %v1529_v3 = vpop.f32.mrf.mxu2  ;;  %3063 = vrcp.f32 %v3750_v2  ;;  %v730_v7 = vsub.f32 1.0, %v729_v1 }
  0xea   : > { %v3754_v4 = vadd.f32 %v3721_v39, %v1529_v3  ;;  %v527_v5 = vpop.f32.mrf.mxu0  ;;  %v755_v53 = vor.u32 1.1754944e-38, %v754_v37  ;;  %vm753_vm10 = vcmp.eq.f32.partialorder %v752_v52, 8.507059e+37 }
  0xeb   : > { %v3758_v9 = vadd.f32 %v3714_v32, %v527_v5  ;;  %v731_v16 = vmul.f32 %v3745_v0, %v730_v7  ;;  %v1743_v7 = vand.u32 2147483648, %v3742_v60 }
  0xec   : > { %v3058_v6 = vpop.eup %3057  ;;  %v2796_v8 = vmul.f32 -1.442695, %v3754_v4 }
  0xed   : > { %v3760_v10 = vpop.eup %3059  ;;  %v3762_v11 = vadd.f32 1.0, %v3058_v6  ;;  %v2701_v14 = vmul.f32 -1.442695, %v3758_v9  ;;  %v732_v26 = vadd.f32 %v3745_v0, %v731_v16  ;;  %v1741_v6 = vand.u32 2147483647, %v3742_v60 }
  0xee   : > { %v3062_v12 = vpop.eup %3061  ;;  %3065 = vpow2.f32 %v2796_v8  ;;  %v1733_v17 = vmul.f32 %v3760_v10, %v3742_v60  ;;  %vm1738_vm7 = vweird.f32 %v3760_v10 }
  0xef   : > { %3067 = vrcp.f32 %v3762_v11  ;;  %v3765_v13 = vadd.f32 1.0, %v3062_v12  ;;  %v3768_v15 = vpop.eup %3063  ;;  %v736_v44 = vsel %vm3792_vm2, %v3745_v0, %v732_v26  ;;  %vm3850_vm11 = vmor %vm1737_vm4, %vm1738_vm7  ;;  %vm1752_vm12 = vweird.f32 %v3762_v11 }
  0xf0   : > { %3069 = vpow2.f32 %v2701_v14  ;;  %v744_v24 = vmul.f32 %v3768_v15, %v3750_v2  ;;  %v1734_v27 = vsub.f32 1.0, %v1733_v17  ;;  %vm749_vm6 = vweird.f32 %v3768_v15 }
  0xf1   : > { %v1531_v18 = vpop.f32.mrf.mxu2  ;;  %3071 = vrcp.f32 %v3765_v13  ;;  %v741_v55 = vsel %vm3799_vm3, %v740_v38, %v736_v44  ;;  %vm750_vm8 = vmor %vm748_vm5, %vm749_vm6  ;;  %v1758_v2 = vand.u32 2147483648, %v3762_v11  ;;  %v1756_v16 = vand.u32 2147483647, %v3762_v11 }
  0xf2   : > { %v3780_v22 = vadd.f32 %v3721_v39, %v1531_v18  ;;  %v530_v23 = vpop.f32.mrf.mxu0  ;;  %v745_v34 = vsub.f32 1.0, %v744_v24  ;;  %v1735_v45 = vmul.f32 %v3760_v10, %v1734_v27  ;;  %v1208_v17 = vmul.f32 %v741_v55, %v3718_v36 }
  0xf3   : > { %v3786_v28 = vadd.f32 %v3714_v32, %v530_v23  ;;  %v1759_v30 = vor.u32 1.1754944e-38, %v1758_v2  ;;  %vm1742_vm14 = vcmp.eq.f32.partialorder %v1741_v6, 8.507059e+37  ;;  %vm1757_vm15 = vcmp.eq.f32.partialorder %v1756_v16, 8.507059e+37 }
  0xf4   : > { %v3066_v25 = vpop.eup %3065  ;;  %v2797_v33 = vmul.f32 -1.442695, %v3780_v22  ;;  %v746_v50 = vmul.f32 %v3768_v15, %v745_v34  ;;  %v1736_v61 = vadd.f32 %v3760_v10, %v1735_v45  ;;  %v769_v44 = vand.u32 2147483648, %v3765_v13 }
  0xf5   : > { %v3788_v29 = vpop.eup %3067  ;;  %v3796_v31 = vadd.f32 1.0, %v3066_v25  ;;  %569 = vmatmul.bf16.gmra.mxu0 %v2907_v20  ;;  %v2702_v40 = vmul.f32 -1.442695, %v3786_v28  ;;  %v1744_v25 = vor.u32 1.1754944e-38, %v1743_v7  ;;  %vm763_vm0 = vweird.f32 %v3765_v13 }
  0xf6   : > { %1573 = vmatmul.bf16.gmra.mxu2 %v2907_v20  ;;  %v1748_v41 = vmul.f32 %v3788_v29, %v3762_v11  ;;  %v3070_v42 = vpop.eup %3069  ;;  %v747_v57 = vadd.f32 %v3768_v15, %v746_v50  ;;  %vm1753_vm9 = vweird.f32 %v3788_v29  ;;  %v1740_v23 = vsel %vm3850_vm11, %v3760_v10, %v1736_v61 }
  0xf7   : > { %3073 = vrcp.f32 %v3796_v31  ;;  %v3814_v46 = vpop.eup %3071  ;;  %v3816_v48 = vadd.f32 1.0, %v3070_v42  ;;  %vm3863_vm13 = vmor %vm1752_vm12, %vm1753_vm9  ;;  %v767_v10 = vand.u32 2147483647, %v3765_v13  ;;  %v1745_v35 = vsel %vm1742_vm14, %v1744_v25, %v1740_v23 }
  0xf8   : > { %3075 = vpow2.f32 %v2797_v33  ;;  %v1749_v58 = vsub.f32 1.0, %v1748_v41  ;;  %v759_v62 = vmul.f32 %v3814_v46, %v3765_v13  ;;  %v751_v1 = vsel %vm750_vm8, %v3768_v15, %v747_v57  ;;  %v2908_v33 = vld [vmem:[%s3692_s25 + $0x58] sm:$0xff] }
  0xf9   : > { %v1534_v49 = vpop.f32.mrf.mxu2  ;;  %3077 = vpow2.f32 %v2702_v40  ;;  %v756_v14 = vsel %vm753_vm10, %v755_v53, %v751_v1  ;;  %v2212_v53 = vmul.f32 %v1745_v35, %v3724_v43  ;;  %vm764_vm1 = vweird.f32 %v3814_v46 }
  0xfa   : > { %v3822_v51 = vadd.f32 %v3721_v39, %v1534_v49  ;;  %v532_v56 = vpop.f32.mrf.mxu0  ;;  %3079 = vrcp.f32 %v3816_v48  ;;  %v1750_v3 = vmul.f32 %v3788_v29, %v1749_v58  ;;  %v760_v18 = vsub.f32 1.0, %v759_v62  ;;  %vm3907_vm3 = vmor %vm763_vm0, %vm764_vm1 }
  0xfb   : > { %v3837_v0 = vadd.f32 %v3714_v32, %v532_v56  ;;  %v1209_v20 = vmul.f32 %v756_v14, %v3728_v47  ;;  %vm3899_vm2 = vcmp.eq.f32.partialorder %v767_v10, 8.507059e+37  ;;  %v770_v13 = vor.u32 1.1754944e-38, %v769_v44 }
  0xfc   : > { %v2798_v63 = vmul.f32 -1.442695, %v3822_v51  ;;  %v1751_v15 = vadd.f32 %v3788_v29, %v1750_v3  ;;  %v761_v37 = vmul.f32 %v3814_v46, %v760_v18  ;;  %v1773_v12 = vand.u32 2147483648, %v3796_v31 }
  0xfd   : > { %v3841_v5 = vpop.eup %3073  ;;  %v2703_v36 = vmul.f32 -1.442695, %v3837_v0  ;;  %v1240_v27 = vpack.c.bf16 %v1209_v20, %v1208_v17  ;;  %vm778_vm5 = vweird.f32 %v3816_v48  ;;  %v782_v14 = vand.u32 2147483647, %v3816_v48 }
  0xfe   : > { %v3076_v8 = vpop.eup %3075  ;;  %3081 = vpow2.f32 %v2798_v63  ;;  %v1755_v24 = vsel %vm3863_vm13, %v3788_v29, %v1751_v15  ;;  %v1763_v26 = vmul.f32 %v3841_v5, %v3796_v31  ;;  %v762_v55 = vadd.f32 %v3814_v46, %v761_v37 }
  0xff   : > { %v3858_v19 = vadd.f32 1.0, %v3076_v8  ;;  %v3078_v21 = vpop.eup %3077  ;;  %1332 = vmatmul.bf16.vlgmr.msra.gmra.mxu1 %v1240_v27  ;;  %v1760_v38 = vsel %vm1757_vm15, %v1759_v30, %v1755_v24  ;;  %v784_v8 = vand.u32 2147483648, %v3816_v48  ;;  %vm1768_vm6 = vweird.f32 %v3841_v5 }
 0x100   : > { %v3874_v47 = vpop.eup %3079  ;;  %v3885_v40 = vadd.f32 1.0, %v3078_v21  ;;  %v2213_v42 = vmul.f32 %v1760_v38, %v3735_v54  ;;  %v1764_v45 = vsub.f32 1.0, %v1763_v26  ;;  %v766_v16 = vsel %vm3907_vm3, %v3814_v46, %v762_v55 }
 0x101   : > { %v1536_v11 = vpop.f32.mrf.mxu2  ;;  %3083 = vrcp.f32 %v3858_v19  ;;  %v774_v50 = vmul.f32 %v3874_v47, %v3816_v48  ;;  %vm779_vm4 = vweird.f32 %v3874_v47  ;;  %v785_v21 = vor.u32 1.1754944e-38, %v784_v8 }
 0x102   : > { %v535_v34 = vpop.f32.mrf.mxu0  ;;  %3085 = vpow2.f32 %v2703_v36  ;;  %v3888_v41 = vadd.f32 %v3721_v39, %v1536_v11  ;;  %v2244_v58 = vpack.c.bf16 %v2213_v42, %v2212_v53  ;;  %v1765_v63 = vmul.f32 %v3841_v5, %v1764_v45  ;;  %vm780_vm7 = vmor %vm778_vm5, %vm779_vm4 }
 0x103   : > { %v3883_v29 = vadd.f32 %v3714_v32, %v535_v34  ;;  %3087 = vrcp.f32 %v3885_v40  ;;  %v775_v62 = vsub.f32 1.0, %v774_v50  ;;  %v771_v11 = vsel %vm3899_vm2, %v770_v13, %v766_v16 }
 0x104   : > { %v3082_v52 = vpop.eup %3081  ;;  %v2799_v57 = vmul.f32 -1.442695, %v3888_v41  ;;  %2338 = vmatmul.bf16.vlgmr.msra.gmra.mxu3 %v2244_v58  ;;  %v1766_v20 = vadd.f32 %v3841_v5, %v1765_v63  ;;  %vm1767_vm8 = vweird.f32 %v3796_v31  ;;  %v1771_v24 = vand.u32 2147483647, %v3796_v31  ;;  %v2909_v31 = vld [vmem:[%s3692_s25 + $0x60] sm:$0xff] }
 0x105   : > { %v2704_v49 = vmul.f32 -1.442695, %v3883_v29  ;;  %574 = vmatmul.bf16.gmra.mxu0 %v2908_v33  ;;  %v3912_v1 = vadd.f32 1.0, %v3082_v52  ;;  %v776_v2 = vmul.f32 %v3874_v47, %v775_v62  ;;  %vm783_vm9 = vcmp.eq.f32.partialorder %v782_v14, 8.507059e+37  ;;  %vm3944_vm10 = vmor %vm1767_vm8, %vm1768_vm6 }
 0x106   : > { %1578 = vmatmul.bf16.gmra.mxu2 %v2908_v33  ;;  %v1770_v30 = vsel %vm3944_vm10, %v3841_v5, %v1766_v20  ;;  %v1210_v34 = vmul.f32 %v771_v11, %v3740_v59  ;;  %v1774_v35 = vor.u32 1.1754944e-38, %v1773_v12  ;;  %vm1772_vm11 = vcmp.eq.f32.partialorder %v1771_v24, 8.507059e+37 }
 0x107   : > { %v3903_v56 = vpop.eup %3083  ;;  %3089 = vpow2.f32 %v2704_v49  ;;  %v777_v18 = vadd.f32 %v3874_v47, %v776_v2  ;;  %v797_v5 = vand.u32 2147483647, %v3885_v40  ;;  %vm1782_vm13 = vweird.f32 %v3858_v19 }
 0x108   : > { %v3086_v3 = vpop.eup %3085  ;;  %v1778_v15 = vmul.f32 %v3903_v56, %v3858_v19  ;;  %3091 = vpow2.f32 %v2799_v57  ;;  %v1775_v50 = vsel %vm1772_vm11, %v1774_v35, %v1770_v30  ;;  %vm1783_vm12 = vweird.f32 %v3903_v56 }
 0x109   : > { %v1539_v61 = vpop.f32.mrf.mxu2  ;;  %3093 = vrcp.f32 %v3912_v1  ;;  %v3935_v60 = vadd.f32 1.0, %v3086_v3  ;;  %v3937_v48 = vpop.eup %3087  ;;  %v781_v46 = vsel %vm780_vm7, %v3874_v47, %v777_v18  ;;  %v1788_v58 = vand.u32 2147483648, %v3858_v19  ;;  %vm3986_vm15 = vmor %vm1782_vm13, %vm1783_vm12 }
 0x10a   : > { %v3915_v6 = vadd.f32 %v3721_v39, %v1539_v61  ;;  %v3917_v7 = vpop.f32.mrf.mxu0  ;;  %v1779_v23 = vsub.f32 1.0, %v1778_v15  ;;  %v786_v26 = vsel %vm783_vm9, %v785_v21, %v781_v46  ;;  %v789_v33 = vmul.f32 %v3937_v48, %v3885_v40 }
 0x10b   : > { %v1211_v38 = vmul.f32 %v786_v26, %v3758_v9  ;;  %v1786_v9 = vand.u32 2147483647, %v3858_v19  ;;  %vm793_vm14 = vweird.f32 %v3885_v40  ;;  %v2214_v13 = vmul.f32 %v1775_v50, %v3754_v4 }
 0x10c   : > { %v2800_v17 = vmul.f32 -1.442695, %v3915_v6  ;;  %v1780_v47 = vmul.f32 %v3903_v56, %v1779_v23  ;;  %v790_v59 = vsub.f32 1.0, %v789_v33  ;;  %v799_v63 = vand.u32 2147483648, %v3885_v40 }
 0x10d   : > { %v3090_v36 = vpop.eup %3089  ;;  %v1241_v52 = vpack.c.bf16 %v1211_v38, %v1210_v34  ;;  %v3994_v3 = vadd.f32 %v3714_v32, %v3917_v7  ;;  %v1789_v12 = vor.u32 1.1754944e-38, %v1788_v58  ;;  %vm4004_vm0 = vcmp.eq.f32.partialorder %v797_v5, 8.507059e+37 }
 0x10e   : > { %3095 = vpow2.f32 %v2800_v17  ;;  %v3092_v10 = vpop.eup %3091  ;;  %v3959_v37 = vadd.f32 1.0, %v3090_v36  ;;  %v1781_v53 = vadd.f32 %v3903_v56, %v1780_v47  ;;  %v791_v8 = vmul.f32 %v3937_v48, %v790_v59 }
 0x10f   : > { %3097 = vrcp.f32 %v3935_v60  ;;  %v3962_v44 = vpop.eup %3093  ;;  %v3970_v55 = vadd.f32 1.0, %v3092_v10  ;;  %1337 = vmatmul.bf16.gmra.mxu1 %v1241_v52  ;;  %vm1787_vm1 = vcmp.eq.f32.partialorder %v1786_v9, 8.507059e+37  ;;  %vm794_vm2 = vweird.f32 %v3937_v48 }
 0x110   : > { %v1793_v54 = vmul.f32 %v3962_v44, %v3912_v1  ;;  %3099 = vrcp.f32 %v3959_v37  ;;  %v1785_v19 = vsel %vm3986_vm15, %v3903_v56, %v1781_v53  ;;  %v2705_v46 = vmul.f32 -1.442695, %v3994_v3  ;;  %vm4032_vm3 = vmor %vm793_vm14, %vm794_vm2 }
 0x111   : > { %v3948_v27 = vpop.f32.mrf.mxu2  ;;  %3101 = vrcp.f32 %v3970_v55  ;;  %v1790_v16 = vsel %vm1787_vm1, %v1789_v12, %v1785_v19  ;;  %v800_v36 = vor.u32 1.1754944e-38, %v799_v63  ;;  %v1801_v11 = vand.u32 2147483647, %v3912_v1 }
 0x112   : > { %v540_v42 = vpop.f32.mrf.mxu0  ;;  %v1794_v15 = vsub.f32 1.0, %v1793_v54  ;;  %v2215_v21 = vmul.f32 %v1790_v16, %v3780_v22  ;;  %v792_v25 = vadd.f32 %v3937_v48, %v791_v8  ;;  %v4026_v47 = vadd.f32 %v3721_v39, %v3948_v27  ;;  %v2910_v54 = vld [vmem:[%s3692_s25 + $0x68] sm:$0xff] }
 0x113   : > { %v3966_v45 = vadd.f32 %v3714_v32, %v540_v42  ;;  %vm1797_vm4 = vweird.f32 %v3912_v1  ;;  %v814_v34 = vand.u32 2147483648, %v3935_v60  ;;  %v1803_v35 = vand.u32 2147483648, %v3912_v1 }
 0x114   : > { %v3096_v49 = vpop.eup %3095  ;;  %v1795_v26 = vmul.f32 %v3962_v44, %v1794_v15  ;;  %v2245_v30 = vpack.c.bf16 %v2215_v21, %v2214_v13  ;;  %v812_v40 = vand.u32 2147483647, %v3935_v60  ;;  %vm1798_vm6 = vweird.f32 %v3962_v44 }
 0x115   : > { %579 = vmatmul.bf16.gmra.mxu0 %v2909_v31  ;;  %v2706_v57 = vmul.f32 -1.442695, %v3966_v45  ;;  %v3979_v61 = vpop.eup %3097  ;;  %v3982_v62 = vadd.f32 1.0, %v3096_v49  ;;  %vm4047_vm7 = vcmp.eq.f32.partialorder %v1801_v11, 8.507059e+37  ;;  %v796_v52 = vsel %vm4032_vm3, %v3937_v48, %v792_v25  ;;  %vm4078_vm11 = vmor %vm1797_vm4, %vm1798_vm6 }
 0x116   : > { %1583 = vmatmul.bf16.gmra.mxu2 %v2909_v31  ;;  %v804_v56 = vmul.f32 %v3979_v61, %v3935_v60  ;;  %v4015_v20 = vpop.eup %3099  ;;  %2343 = vmatmul.bf16.gmra.mxu3 %v2245_v30  ;;  %vm809_vm5 = vweird.f32 %v3979_v61  ;;  %v1796_v53 = vadd.f32 %v3962_v44, %v1795_v26  ;;  %v2801_v59 = vmul.f32 -1.442695, %v4026_v47 }
 0x117   : > { %3103 = vpow2.f32 %v2706_v57  ;;  %v4028_v33 = vpop.eup %3101  ;;  %v819_v31 = vmul.f32 %v4015_v20, %v3959_v37  ;;  %vm808_vm8 = vweird.f32 %v3935_v60  ;;  %v815_v13 = vor.u32 1.1754944e-38, %v814_v34 }
 0x118   : > { %3105 = vrcp.f32 %v3982_v62  ;;  %v805_v23 = vsub.f32 1.0, %v804_v56  ;;  %vm810_vm9 = vmor %vm808_vm8, %vm809_vm5  ;;  %v1808_v63 = vmul.f32 %v4028_v33, %v3970_v55  ;;  %vm813_vm10 = vcmp.eq.f32.partialorder %v812_v40, 8.507059e+37 }
 0x119   : > { %v1544_v2 = vpop.f32.mrf.mxu2  ;;  %v820_v58 = vsub.f32 1.0, %v819_v31  ;;  %v1800_v4 = vsel %vm4078_vm11, %v3962_v44, %v1796_v53  ;;  %v1804_v56 = vor.u32 1.1754944e-38, %v1803_v35  ;;  %v827_v1 = vand.u32 2147483647, %v3959_v37 }
 0x11a   : > { %v4002_v14 = vadd.f32 %v3721_v39, %v1544_v2  ;;  %v542_v7 = vpop.f32.mrf.mxu0  ;;  %v806_v10 = vmul.f32 %v3979_v61, %v805_v23  ;;  %v801_v2 = vsel %vm4004_vm0, %v800_v36, %v796_v52  ;;  %v1809_v21 = vsub.f32 1.0, %v1808_v63 }
 0x11b   : > { %v4013_v18 = vadd.f32 %v3714_v32, %v542_v7  ;;  %v1212_v23 = vmul.f32 %v801_v2, %v3786_v28  ;;  %vm823_vm12 = vweird.f32 %v3959_v37  ;;  %vm824_vm13 = vweird.f32 %v4015_v20 }
 0x11c   : > { %v2802_v17 = vmul.f32 -1.442695, %v4002_v14  ;;  %v807_v49 = vadd.f32 %v3979_v61, %v806_v10  ;;  %v829_v44 = vand.u32 2147483648, %v3959_v37  ;;  %v1810_v30 = vmul.f32 %v4028_v33, %v1809_v21  ;;  %vm4108_vm14 = vmor %vm823_vm12, %vm824_vm13 }
 0x11d   : > { %v2707_v24 = vmul.f32 -1.442695, %v4013_v18  ;;  %v3104_v27 = vpop.eup %3103  ;;  %vm4112_vm15 = vcmp.eq.f32.partialorder %v827_v1, 8.507059e+37  ;;  %vm1813_vm0 = vweird.f32 %v4028_v33  ;;  %v1818_v5 = vand.u32 2147483648, %v3970_v55 }
 0x11e   : > { %3107 = vpow2.f32 %v2802_v17  ;;  %v4044_v42 = vpop.eup %3105  ;;  %v4062_v43 = vadd.f32 1.0, %v3104_v27  ;;  %v811_v19 = vsel %vm810_vm9, %v3979_v61, %v807_v49  ;;  %v821_v17 = vmul.f32 %v4015_v20, %v820_v58 }
 0x11f   : > { %3109 = vpow2.f32 %v2705_v46  ;;  %v1823_v48 = vmul.f32 %v4044_v42, %v3982_v62  ;;  %v816_v15 = vsel %vm813_vm10, %v815_v13, %v811_v19  ;;  %v830_v40 = vor.u32 1.1754944e-38, %v829_v44 }
 0x120   : > { %3111 = vpow2.f32 %v2707_v24  ;;  %v1213_v46 = vmul.f32 %v816_v15, %v3837_v0  ;;  %v1805_v24 = vsel %vm4047_vm7, %v1804_v56, %v1800_v4  ;;  %v822_v28 = vadd.f32 %v4015_v20, %v821_v17 }
 0x121   : > { %v1546_v38 = vpop.f32.mrf.mxu2  ;;  %3113 = vpow2.f32 %v2801_v59  ;;  %v1824_v36 = vsub.f32 1.0, %v1823_v48  ;;  %v4121_v35 = vmul.f32 %v1805_v24, %v3822_v51  ;;  %vm1812_vm1 = vweird.f32 %v3970_v55 }
 0x122   : > { %v4053_v50 = vadd.f32 %v3721_v39, %v1546_v38  ;;  %v545_v9 = vpop.f32.mrf.mxu0  ;;  %3115 = vrcp.f32 %v4062_v43  ;;  %v1242_v0 = vpack.c.bf16 %v1213_v46, %v1212_v23  ;;  %v1811_v38 = vadd.f32 %v4028_v33, %v1810_v30  ;;  %vm4141_vm2 = vmor %vm1812_vm1, %vm1813_vm0 }
 0x123   : > { %v4085_v7 = vadd.f32 %v3714_v32, %v545_v9  ;;  %v1825_v34 = vmul.f32 %v4044_v42, %v1824_v36  ;;  %v1816_v52 = vand.u32 2147483647, %v3970_v55  ;;  %v826_v51 = vsel %vm4108_vm14, %v4015_v20, %v822_v28 }
 0x124   : > { %v3108_v57 = vpop.eup %3107  ;;  %v2803_v60 = vmul.f32 -1.442695, %v4053_v50  ;;  %1342 = vmatmul.bf16.gmra.mxu1 %v1242_v0  ;;  %v1831_v9 = vand.u32 2147483647, %v3982_v62  ;;  %vm1828_vm3 = vweird.f32 %v4044_v42  ;;  %v1815_v20 = vsel %vm4141_vm2, %v4028_v33, %v1811_v38 }
 0x125   : > { %v4082_v12 = vadd.f32 1.0, %v3108_v57  ;;  %584 = vmatmul.bf16.gmra.mxu0 %v2910_v54  ;;  %v3110_v61 = vpop.eup %3109  ;;  %v2708_v11 = vmul.f32 -1.442695, %v4085_v7  ;;  %v1826_v58 = vadd.f32 %v4044_v42, %v1825_v34  ;;  %vm1827_vm4 = vweird.f32 %v3982_v62 }
 0x126   : > { %1588 = vmatmul.bf16.gmra.mxu2 %v2910_v54  ;;  %v3112_v16 = vpop.eup %3111  ;;  %3117 = vpow2.f32 %v2803_v60  ;;  %v4105_v26 = vadd.f32 1.0, %v3110_v61  ;;  %v1833_v54 = vand.u32 2147483648, %v3982_v62  ;;  %v1819_v60 = vor.u32 1.1754944e-38, %v1818_v5  ;;  %vm4162_vm6 = vmor %vm1827_vm4, %vm1828_vm3 }
 0x127   : > { %3119 = vrcp.f32 %v4082_v12  ;;  %v4102_v25 = vadd.f32 1.0, %v3112_v16  ;;  %v3114_v31 = vpop.eup %3113  ;;  %v831_v2 = vsel %vm4112_vm15, %v830_v40, %v826_v51  ;;  %vm1817_vm5 = vcmp.eq.f32.partialorder %v1816_v52, 8.507059e+37 }
 0x128   : > { %3121 = vpow2.f32 %v2708_v11  ;;  %v4118_v27 = vpop.eup %3115  ;;  %v4147_v13 = vadd.f32 1.0, %v3114_v31  ;;  %vm4166_vm7 = vcmp.eq.f32.partialorder %v1831_v9, 8.507059e+37  ;;  %v1834_v61 = vor.u32 1.1754944e-38, %v1833_v54 }
 0x129   : > { %v1549_v22 = vpop.f32.mrf.mxu2  ;;  %3123 = vrcp.f32 %v4102_v25  ;;  %v849_v48 = vmul.f32 %v4118_v27, %v4062_v43  ;;  %v1820_v4 = vsel %vm1817_vm5, %v1819_v60, %v1815_v20  ;;  %v1830_v16 = vsel %vm4162_vm6, %v4044_v42, %v1826_v58 }
 0x12a   : > { %v4129_v53 = vadd.f32 %v3721_v39, %v1549_v22  ;;  %3125 = vrcp.f32 %v4105_v26  ;;  %v547_v55 = vpop.f32.mrf.mxu0  ;;  %v859_v17 = vand.u32 2147483648, %v4062_v43  ;;  %v4185_v23 = vmul.f32 %v831_v2, %v3883_v29 }
 0x12b   : > { %v4171_v56 = vadd.f32 %v3714_v32, %v547_v55  ;;  %3127 = vrcp.f32 %v4147_v13  ;;  %v850_v36 = vsub.f32 1.0, %v849_v48  ;;  %v857_v11 = vand.u32 2147483647, %v4062_v43 }
 0x12c   : > { %v3118_v49 = vpop.eup %3117  ;;  %v2804_v15 = vmul.f32 -1.442695, %v4129_v53  ;;  %v1863_v42 = vand.u32 2147483648, %v4082_v12  ;;  %v2217_v0 = vmul.f32 %v1820_v4, %v3888_v41  ;;  %v1835_v28 = vsel %vm4166_vm7, %v1834_v61, %v1830_v16 }
 0x12d   : > { %v4131_v59 = vpop.eup %3119  ;;  %v4155_v19 = vadd.f32 1.0, %v3118_v49  ;;  %vm853_vm8 = vweird.f32 %v4062_v43  ;;  %v2709_v30 = vmul.f32 -1.442695, %v4171_v56  ;;  %v4197_v22 = vor.u32 1.1754944e-38, %v859_v17 }
 0x12e   : > { %v3122_v63 = vpop.eup %3121  ;;  %v1853_v8 = vmul.f32 %v4131_v59, %v4082_v12  ;;  %v874_v31 = vand.u32 2147483648, %v4102_v25  ;;  %v2246_v10 = vpack.c.bf16 %v2217_v0, %v4121_v35  ;;  %v851_v41 = vmul.f32 %v4118_v27, %v850_v36 }
 0x12f   : > { %v4173_v1 = vpop.eup %3123  ;;  %v4180_v46 = vadd.f32 1.0, %v3122_v63  ;;  %3129 = vrcp.f32 %v4155_v19  ;;  %v1861_v37 = vand.u32 2147483647, %v4082_v12  ;;  %v4209_v5 = vmul.f32 %v1835_v28, %v3915_v6  ;;  %v2911_v63 = vld [vmem:[%s3692_s25 + $0x70] sm:$0xff] }
 0x130   : > { %v4182_v21 = vpop.eup %3125  ;;  %v1854_v24 = vsub.f32 1.0, %v1853_v8  ;;  %3131 = vpow2.f32 %v2804_v15  ;;  %v864_v29 = vmul.f32 %v4173_v1, %v4102_v25  ;;  %vm4211_vm9 = vcmp.eq.f32.partialorder %v857_v11, 8.507059e+37  ;;  %2348 = vmatmul.bf16.gmra.mxu3 %v2246_v10 }
 0x131   : > { %v1551_v44 = vpop.f32.mrf.mxu2  ;;  %3133 = vrcp.f32 %v4180_v46  ;;  %v834_v34 = vmul.f32 %v4182_v21, %v4105_v26  ;;  %v4206_v38 = vpop.eup %3127  ;;  %vm1857_vm10 = vweird.f32 %v4082_v12  ;;  %v4217_v52 = vor.u32 1.1754944e-38, %v1863_v42 }
 0x132   : > { %3135 = vpow2.f32 %v2709_v30  ;;  %v550_v40 = vpop.f32.mrf.mxu0  ;;  %v1855_v35 = vmul.f32 %v4131_v59, %v1854_v24  ;;  %vm854_vm11 = vweird.f32 %v4118_v27  ;;  %v865_v9 = vsub.f32 1.0, %v864_v29 }
 0x133   : > { %v872_v6 = vand.u32 2147483647, %v4102_v25  ;;  %v835_v54 = vsub.f32 1.0, %v834_v34  ;;  %vm1858_vm12 = vweird.f32 %v4131_v59  ;;  %v4224_v55 = vor.u32 1.1754944e-38, %v874_v31  ;;  %vm4254_vm0 = vmor %vm853_vm8, %vm854_vm11 }
 0x134   : > { %v4227_v58 = vadd.f32 %v3721_v39, %v1551_v44  ;;  %v4230_v20 = vadd.f32 %v3714_v32, %v550_v40  ;;  %v852_v48 = vadd.f32 %v4118_v27, %v851_v41  ;;  %vm4234_vm13 = vcmp.eq.f32.partialorder %v1861_v37, 8.507059e+37  ;;  %vm4272_vm2 = vmor %vm1857_vm10, %vm1858_vm12 }
 0x135   : > { %v4219_v51 = vpop.eup %3129  ;;  %vm869_vm14 = vweird.f32 %v4173_v1  ;;  %v836_v8 = vmul.f32 %v4182_v21, %v835_v54  ;;  %v1856_v33 = vadd.f32 %v4131_v59, %v1855_v35  ;;  %vm868_vm15 = vweird.f32 %v4102_v25  ;;  %589 = vmatmul.bf16.gmra.mxu0 %v2911_v63 }
 0x136   : > { %v3132_v57 = vpop.eup %3131  ;;  %v1868_v32 = vmul.f32 %v4219_v51, %v4155_v19  ;;  %v844_v62 = vand.u32 2147483648, %v4105_v26  ;;  %v2805_v61 = vmul.f32 -1.442695, %v4227_v58  ;;  %1593 = vmatmul.bf16.gmra.mxu2 %v2911_v63  ;;  %v866_v17 = vmul.f32 %v4173_v1, %v865_v9 }
 0x137   : > { %v4239_v2 = vadd.f32 1.0, %v3132_v57  ;;  %v4242_v15 = vpop.eup %3133  ;;  %vm839_vm1 = vweird.f32 %v4182_v21  ;;  %v842_v36 = vand.u32 2147483647, %v4105_v26  ;;  %v2710_v11 = vmul.f32 -1.442695, %v4230_v20 }
 0x138   : > { %v3136_v4 = vpop.eup %3135  ;;  %v837_v42 = vadd.f32 %v4182_v21, %v836_v8  ;;  %v1838_v43 = vmul.f32 %v4206_v38, %v4147_v13  ;;  %v1876_v28 = vand.u32 2147483647, %v4155_v19  ;;  %v879_v29 = vmul.f32 %v4242_v15, %v4180_v46 }
 0x139   : > { %v1554_v44 = vpop.f32.mrf.mxu2  ;;  %3137 = vrcp.f32 %v4239_v2  ;;  %v4263_v24 = vadd.f32 1.0, %v3136_v4  ;;  %vm838_vm3 = vweird.f32 %v4105_v26  ;;  %v856_v30 = vsel %vm4254_vm0, %v4118_v27, %v852_v48 }
 0x13a   : > { %3139 = vpow2.f32 %v2805_v61  ;;  %v1869_v31 = vsub.f32 1.0, %v1868_v32  ;;  %vm840_vm4 = vmor %vm838_vm3, %vm839_vm1  ;;  %v845_v12 = vor.u32 1.1754944e-38, %v844_v62  ;;  %v1860_v10 = vsel %vm4272_vm2, %v4131_v59, %v1856_v33  ;;  %v4291_v37 = vpop.f32.mrf.mxu0 }
 0x13b   : > { %3141 = vrcp.f32 %v4263_v24  ;;  %v1878_v41 = vand.u32 2147483648, %v4155_v19  ;;  %v841_v26 = vsel %vm840_vm4, %v4182_v21, %v837_v42  ;;  %vm843_vm5 = vcmp.eq.f32.partialorder %v842_v36, 8.507059e+37 }
 0x13c   : > { %v867_v27 = vadd.f32 %v4173_v1, %v866_v17  ;;  %vm4294_vm6 = vcmp.eq.f32.partialorder %v872_v6, 8.507059e+37  ;;  %vm1872_vm7 = vweird.f32 %v4155_v19  ;;  %v846_v40 = vsel %vm843_vm5, %v845_v12, %v841_v26 }
 0x13d   : > { %3143 = vpow2.f32 %v2710_v11  ;;  %v1839_v35 = vsub.f32 1.0, %v1838_v43  ;;  %v861_v59 = vsel %vm4211_vm9, %v4197_v22, %v856_v30  ;;  %v880_v9 = vsub.f32 1.0, %v879_v29  ;;  %vm4316_vm9 = vmor %vm868_vm15, %vm869_vm14  ;;  %v2912_v29 = vld [vmem:[%s3692_s25 + $0x78] sm:$0xff]  ;;  %s2453_s25 = scalar_lea.sflag [#allocation4], %s3688_s7 }
 0x13e   : > { %vm883_vm8 = vweird.f32 %v4180_v46  ;;  %v1215_v21 = vmul.f32 %v846_v40, %v3994_v3  ;;  %v1865_v6 = vsel %vm4234_vm13, %v4217_v52, %v1860_v10  ;;  %v1870_v57 = vmul.f32 %v4219_v51, %v1869_v31 }
 0x13f   : > { %v4304_v54 = vpop.eup %3137  ;;  %v887_v63 = vand.u32 2147483647, %v4180_v46  ;;  %v1840_v48 = vmul.f32 %v4206_v38, %v1839_v35  ;;  %vm1843_vm10 = vweird.f32 %v4206_v38  ;;  %v1846_v49 = vand.u32 2147483647, %v4147_v13 }
 0x140   : > { %v3140_v8 = vpop.eup %3139  ;;  %v1243_v3 = vpack.c.bf16 %v1215_v21, %v4185_v23  ;;  %v1848_v52 = vand.u32 2147483648, %v4147_v13  ;;  %v871_v33 = vsel %vm4316_vm9, %v4173_v1, %v867_v27  ;;  %vm4329_vm11 = vcmp.eq.f32.partialorder %v1876_v28, 8.507059e+37 }
 0x141   : > { %v4324_v60 = vpop.eup %3141  ;;  %v4333_v32 = vadd.f32 1.0, %v3140_v8  ;;  %v1841_v23 = vadd.f32 %v4206_v38, %v1840_v48  ;;  %v4337_v62 = vadd.f32 %v3721_v39, %v1554_v44  ;;  %vm1873_vm12 = vweird.f32 %v4219_v51  ;;  %v1556_v1 = vpop.f32.mrf.mxu2 }
 0x142   : > { %v881_v61 = vmul.f32 %v4242_v15, %v880_v9  ;;  %vm884_vm13 = vweird.f32 %v4242_v15  ;;  %1347 = vmatmul.bf16.gmra.mxu1 %v1243_v3  ;;  %vm1842_vm14 = vweird.f32 %v4147_v13  ;;  %v1871_v16 = vadd.f32 %v4219_v51, %v1870_v57  ;;  %v555_v44 = vpop.f32.mrf.mxu0  ;;  %vm4367_vm1 = vmor %vm1872_vm7, %vm1873_vm12 }
 0x143   : > { %v3144_v4 = vpop.eup %3143  ;;  %v894_v17 = vmul.f32 %v4324_v60, %v4263_v24  ;;  %3145 = vrcp.f32 %v4333_v32  ;;  %vm1844_vm15 = vmor %vm1842_vm14, %vm1843_vm10  ;;  %v1849_v39 = vor.u32 1.1754944e-38, %v1848_v52  ;;  %v1883_v36 = vmul.f32 %v4304_v54, %v4239_v2 }
 0x144   : > { %v4351_v11 = vadd.f32 1.0, %v3144_v4  ;;  %v1845_v13 = vsel %vm1844_vm15, %v4206_v38, %v1841_v23  ;;  %vm1847_vm0 = vcmp.eq.f32.partialorder %v1846_v49, 8.507059e+37  ;;  %v4355_v42 = vmul.f32 %v861_v59, %v3966_v45  ;;  %vm4383_vm2 = vmor %vm883_vm8, %vm884_vm13 }
 0x145   : > { %v889_v43 = vand.u32 2147483648, %v4180_v46  ;;  %v1850_v0 = vsel %vm1847_vm0, %v1849_v39, %v1845_v13  ;;  %v2806_v28 = vmul.f32 -1.442695, %v4337_v62  ;;  %v876_v30 = vsel %vm4294_vm6, %v4224_v55, %v871_v33  ;;  %594 = vmatmul.bf16.gmra.mxu0 %v2912_v29 }
 0x146   : > { %v1879_v45 = vor.u32 1.1754944e-38, %v1878_v41  ;;  %v882_v31 = vadd.f32 %v4242_v15, %v881_v61  ;;  %3147 = vrcp.f32 %v4351_v11  ;;  %v4374_v12 = vmul.f32 %v1865_v6, %v4002_v14  ;;  %1598 = vmatmul.bf16.gmra.mxu2 %v2912_v29 }
 0x147   : > { %v1875_v55 = vsel %vm4367_vm1, %v4219_v51, %v1871_v16  ;;  %v895_v10 = vsub.f32 1.0, %v894_v17  ;;  %v2219_v41 = vmul.f32 %v1850_v0, %v4026_v47  ;;  %vm4388_vm3 = vcmp.eq.f32.partialorder %v887_v63, 8.507059e+37  ;;  %v4392_v51 = vld [vmem:[#allocation7] ss:$0 sm:$0xff] }
 0x148   : > { %v1884_v26 = vsub.f32 1.0, %v1883_v36  ;;  %3149 = vpow2.f32 %v2806_v28  ;;  %v4396_v46 = vadd.f32 %v4392_v51, %v4291_v37  ;;  %v1217_v34 = vmul.f32 %v876_v30, %v4013_v18 }
 0x149   : > { %v4398_v27 = vpop.eup %3145  ;;  %v890_v40 = vor.u32 1.1754944e-38, %v889_v43  ;;  %v1891_v47 = vand.u32 2147483647, %v4239_v2  ;;  %v2247_v35 = vpack.c.bf16 %v2219_v41, %v4209_v5  ;;  %v1880_v59 = vsel %vm4329_vm11, %v1879_v45, %v1875_v55  ;;  %v1559_v18 = vpop.f32.mrf.mxu2  ;;  %v4414_v5 = vld [vmem:[#allocation7 + $0x1] ss:$0 sm:$0xff] }
 0x14a   : > { %v886_v9 = vsel %vm4383_vm2, %v4242_v15, %v882_v31  ;;  %vm1887_vm4 = vweird.f32 %v4239_v2  ;;  %v1898_v37 = vmul.f32 %v4398_v27, %v4333_v32  ;;  %v2711_v21 = vmul.f32 -1.442695, %v4396_v46  ;;  %v557_v3 = vpop.f32.mrf.mxu0 }
 0x14b   : > { %v896_v6 = vmul.f32 %v4324_v60, %v895_v10  ;;  %v902_v57 = vand.u32 2147483647, %v4263_v24  ;;  %2353 = vmatmul.bf16.gmra.mxu3 %v2247_v35  ;;  %v4417_v63 = vadd.f32 %v4414_v5, %v1556_v1  ;;  %v4420_v15 = vadd.f32 %v4392_v51, %v555_v44 }
 0x14c   : > { %v4422_v48 = vpop.eup %3147  ;;  %v1885_v8 = vmul.f32 %v4304_v54, %v1884_v26  ;;  %vm1888_vm5 = vweird.f32 %v4304_v54  ;;  %v904_v22 = vand.u32 2147483648, %v4263_v24  ;;  %3151 = vpow2.f32 %v2711_v21 }
 0x14d   : > { %vm899_vm6 = vweird.f32 %v4324_v60  ;;  %v909_v49 = vmul.f32 %v4422_v48, %v4351_v11  ;;  %v2807_v52 = vmul.f32 -1.442695, %v4417_v63  ;;  %v2712_v33 = vmul.f32 -1.442695, %v4420_v15  ;;  %vm4465_vm10 = vmor %vm1887_vm4, %vm1888_vm5 }
 0x14e   : > { %v3150_v25 = vpop.eup %3149  ;;  %v1899_v23 = vsub.f32 1.0, %v1898_v37  ;;  %v1244_v61 = vpack.c.bf16 %v1217_v34, %v4355_v42  ;;  %v4434_v1 = vadd.f32 %v4414_v5, %v1559_v18  ;;  %v4437_v4 = vadd.f32 %v4392_v51, %v557_v3 }
 0x14f   : > { %v897_v16 = vadd.f32 %v4324_v60, %v896_v6  ;;  %v910_v17 = vsub.f32 1.0, %v909_v49  ;;  %v4440_v39 = vadd.f32 1.0, %v3150_v25  ;;  %3153 = vpow2.f32 %v2807_v52 }
 0x150   : > { %v1886_v36 = vadd.f32 %v4304_v54, %v1885_v8  ;;  %3155 = vpow2.f32 %v2712_v33  ;;  %v2808_v13 = vmul.f32 -1.442695, %v4434_v1  ;;  %v2713_v44 = vmul.f32 -1.442695, %v4437_v4 }
 0x151   : > { %v2221_v42 = vmul.f32 %v1880_v59, %v4053_v50  ;;  %v891_v43 = vsel %vm4388_vm3, %v890_v40, %v886_v9  ;;  %v1893_v0 = vand.u32 2147483648, %v4239_v2  ;;  %vm898_vm7 = vweird.f32 %v4263_v24  ;;  %v1561_v45 = vpop.f32.mrf.mxu2 }
 0x152   : > { %v3152_v28 = vpop.eup %3151  ;;  %vm4452_vm8 = vmor %vm898_vm7, %vm899_vm6  ;;  %vm4456_vm9 = vcmp.eq.f32.partialorder %v902_v57, 8.507059e+37  ;;  %v905_v38 = vor.u32 1.1754944e-38, %v904_v22  ;;  %v1900_v50 = vmul.f32 %v4398_v27, %v1899_v23  ;;  %1352 = vmatmul.bf16.gmra.mxu1 %v1244_v61  ;;  %3157 = vpow2.f32 %v2808_v13  ;;  %v560_v14 = vpop.f32.mrf.mxu0 }
 0x153   : > { %v901_v31 = vsel %vm4452_vm8, %v4324_v60, %v897_v16  ;;  %v911_v55 = vmul.f32 %v4422_v48, %v910_v17  ;;  %3159 = vrcp.f32 %v4440_v39  ;;  %v4474_v19 = vadd.f32 1.0, %v3152_v28 }
 0x154   : > { %v1890_v10 = vsel %vm4465_vm10, %v4304_v54, %v1886_v36  ;;  %v1908_v41 = vand.u32 2147483648, %v4333_v32  ;;  %vm913_vm11 = vweird.f32 %v4351_v11  ;;  %3161 = vpow2.f32 %v2713_v44 }
 0x155   : > { %v3154_v26 = vpop.eup %3153  ;;  %vm914_vm12 = vweird.f32 %v4422_v48  ;;  %v917_v60 = vand.u32 2147483647, %v4351_v11  ;;  %v919_v34 = vand.u32 2147483648, %v4351_v11  ;;  %3163 = vrcp.f32 %v4474_v19 }
 0x156   : > { %v3156_v40 = vpop.eup %3155  ;;  %v906_v35 = vsel %vm4456_vm9, %v905_v38, %v901_v31  ;;  %v1901_v54 = vadd.f32 %v4398_v27, %v1900_v50  ;;  %vm1903_vm13 = vweird.f32 %v4398_v27  ;;  %v4489_v59 = vadd.f32 1.0, %v3154_v26  ;;  %vm4503_vm0 = vmor %vm913_vm11, %vm914_vm12 }
 0x157   : > { %v1894_v9 = vor.u32 1.1754944e-38, %v1893_v0  ;;  %v912_v37 = vadd.f32 %v4422_v48, %v911_v55  ;;  %v4492_v21 = vadd.f32 1.0, %v3156_v40  ;;  %v2248_v18 = vpack.c.bf16 %v2221_v42, %v4374_v12 }
 0x158   : > { %v3158_v6 = vpop.eup %3157  ;;  %vm1892_vm14 = vcmp.eq.f32.partialorder %v1891_v47, 8.507059e+37  ;;  %vm1902_vm15 = vweird.f32 %v4333_v32  ;;  %v1906_v57 = vand.u32 2147483647, %v4333_v32  ;;  %3165 = vrcp.f32 %v4489_v59 }
 0x159   : > { %v4508_v22 = vpop.eup %3159  ;;  %v1218_v12 = vmul.f32 %v891_v43, %v4085_v7  ;;  %v1895_v2 = vsel %vm1892_vm14, %v1894_v9, %v1890_v10  ;;  %v1219_v47 = vmul.f32 %v906_v35, %v4171_v56  ;;  %vm4514_vm1 = vmor %vm1902_vm15, %vm1903_vm13  ;;  %3167 = vrcp.f32 %v4492_v21  ;;  %v4526_v56 = vpop.f32.mrf.mxu2 }
 0x15a   : > { %v3162_v11 = vpop.eup %3161  ;;  %v1905_v3 = vsel %vm4514_vm1, %v4398_v27, %v1901_v54  ;;  %v1909_v49 = vor.u32 1.1754944e-38, %v1908_v41  ;;  %vm4522_vm2 = vcmp.eq.f32.partialorder %v917_v60, 8.507059e+37  ;;  %v920_v7 = vor.u32 1.1754944e-38, %v919_v34  ;;  %v4544_v13 = vpop.f32.mrf.mxu0 }
 0x15b   : > { %v3164_v33 = vpop.eup %3163  ;;  %v916_v25 = vsel %vm4503_vm0, %v4422_v48, %v912_v37  ;;  %2358 = vmatmul.bf16.gmra.mxu3 %v2248_v18  ;;  %v4531_v23 = vadd.f32 1.0, %v3158_v6  ;;  %v4533_v61 = vadd.f32 1.0, %v3162_v11  ;;  %v4536_v27 = vadd.f32 %v4414_v5, %v1561_v45 }
 0x15c   : > { %v4539_v16 = vmul.f32 %v1895_v2, %v4129_v53  ;;  %vm1907_vm3 = vcmp.eq.f32.partialorder %v1906_v57, 8.507059e+37  ;;  %v1913_v17 = vmul.f32 %v4508_v22, %v4440_v39  ;;  %v924_v36 = vmul.f32 %v3164_v33, %v4474_v19 }
 0x15d   : > { %v1910_v48 = vsel %vm1907_vm3, %v1909_v49, %v1905_v3  ;;  %v1923_v44 = vand.u32 2147483648, %v4440_v39  ;;  %3169 = vrcp.f32 %v4531_v23  ;;  %v1245_v42 = vpack.c.bf16 %v1219_v47, %v1218_v12 }
 0x15e   : > { %v4548_v43 = vpop.eup %3165  ;;  %v921_v53 = vsel %vm4522_vm2, %v920_v7, %v916_v25  ;;  %v925_v0 = vsub.f32 1.0, %v924_v36  ;;  %v932_v28 = vand.u32 2147483647, %v4474_v19  ;;  %3171 = vrcp.f32 %v4533_v61 }
 0x15f   : > { %v4554_v29 = vpop.eup %3167  ;;  %v934_v30 = vand.u32 2147483648, %v4474_v19  ;;  %v1928_v38 = vmul.f32 %v4548_v43, %v4489_v59  ;;  %v2809_v50 = vmul.f32 -1.442695, %v4536_v27  ;;  %v4561_v45 = vadd.f32 %v4392_v51, %v560_v14 }
 0x160   : > { %v1914_v24 = vsub.f32 1.0, %v1913_v17  ;;  %v1921_v31 = vand.u32 2147483647, %v4440_v39  ;;  %v926_v55 = vmul.f32 %v3164_v33, %v925_v0  ;;  %vm929_vm4 = vweird.f32 %v3164_v33 }
 0x161   : > { %v2223_v10 = vmul.f32 %v1910_v48, %v4227_v58  ;;  %v4565_v41 = vor.u32 1.1754944e-38, %v1923_v44  ;;  %v1929_v26 = vsub.f32 1.0, %v1928_v38  ;;  %v939_v60 = vmul.f32 %v4554_v29, %v4492_v21  ;;  %v1566_v9 = vpop.f32.mrf.mxu2 }
 0x162   : > { %v4570_v34 = vmul.f32 %v921_v53, %v4230_v20  ;;  %vm1917_vm5 = vweird.f32 %v4440_v39  ;;  %v927_v14 = vadd.f32 %v3164_v33, %v926_v55  ;;  %vm928_vm6 = vweird.f32 %v4474_v19  ;;  %1357 = vmatmul.bf16.gmra.mxu1 %v1245_v42  ;;  %v565_v8 = vpop.f32.mrf.mxu0 }
 0x163   : > { %vm4574_vm7 = vcmp.eq.f32.partialorder %v932_v28, 8.507059e+37  ;;  %v4578_v58 = vpop.eup %3169  ;;  %vm1918_vm8 = vweird.f32 %v4508_v22  ;;  %vm4581_vm9 = vmor %vm928_vm6, %vm929_vm4  ;;  %v935_v20 = vor.u32 1.1754944e-38, %v934_v30  ;;  %3173 = vpow2.f32 %v2809_v50 }
 0x164   : > { %v2714_v54 = vmul.f32 -1.442695, %v4561_v45  ;;  %v4586_v37 = vpop.eup %3171  ;;  %v1915_v19 = vmul.f32 %v4508_v22, %v1914_v24  ;;  %v931_v18 = vsel %vm4581_vm9, %v3164_v33, %v927_v14  ;;  %v1936_v6 = vand.u32 2147483647, %v4489_v59  ;;  %vm4633_vm15 = vmor %vm1917_vm5, %vm1918_vm8 }
 0x165   : > { %v1938_v57 = vand.u32 2147483648, %v4489_v59  ;;  %v1930_v12 = vmul.f32 %v4548_v43, %v1929_v26  ;;  %vm1932_vm10 = vweird.f32 %v4489_v59  ;;  %v940_v2 = vsub.f32 1.0, %v939_v60 }
 0x166   : > { %v954_v47 = vmul.f32 %v4586_v37, %v4533_v61  ;;  %vm943_vm11 = vweird.f32 %v4492_v21  ;;  %v947_v32 = vand.u32 2147483647, %v4492_v21  ;;  %v949_v11 = vand.u32 2147483648, %v4492_v21 }
 0x167   : > { %v1943_v3 = vmul.f32 %v4578_v58, %v4531_v23  ;;  %v936_v49 = vsel %vm4574_vm7, %v935_v20, %v931_v18  ;;  %3175 = vpow2.f32 %v2714_v54  ;;  %v2249_v7 = vpack.c.bf16 %v2223_v10, %v4539_v16 }
 0x168   : > { %v955_v52 = vsub.f32 1.0, %v954_v47  ;;  %v1916_v33 = vadd.f32 %v4508_v22, %v1915_v19  ;;  %vm4606_vm12 = vcmp.eq.f32.partialorder %v1936_v6, 8.507059e+37  ;;  %v1939_v17 = vor.u32 1.1754944e-38, %v1938_v57 }
 0x169   : > { %v4612_v36 = vadd.f32 %v4414_v5, %v4526_v56  ;;  %v3174_v48 = vpop.eup %3173  ;;  %vm4614_vm13 = vcmp.eq.f32.partialorder %v1921_v31, 8.507059e+37  ;;  %v1931_v42 = vadd.f32 %v4548_v43, %v1930_v12  ;;  %vm1933_vm14 = vweird.f32 %v4548_v43  ;;  %v1569_v14 = vpop.f32.mrf.mxu2 }
 0x16a   : > { %v941_v16 = vmul.f32 %v4554_v29, %v940_v2  ;;  %v4623_v53 = vadd.f32 %v4392_v51, %v4544_v13  ;;  %v1221_v0 = vmul.f32 %v936_v49, %v4396_v46  ;;  %v1944_v28 = vsub.f32 1.0, %v1943_v3  ;;  %vm4648_vm1 = vmor %vm1932_vm10, %vm1933_vm14 }
 0x16b   : > { %v4626_v56 = vadd.f32 1.0, %v3174_v48  ;;  %v2810_v30 = vmul.f32 -1.442695, %v4612_v36  ;;  %vm4637_vm0 = vcmp.eq.f32.partialorder %v947_v32, 8.507059e+37  ;;  %v950_v13 = vor.u32 1.1754944e-38, %v949_v11  ;;  %2363 = vmatmul.bf16.gmra.mxu3 %v2249_v7 }
 0x16c   : > { %v956_v46 = vmul.f32 %v4586_v37, %v955_v52  ;;  %v2715_v24 = vmul.f32 -1.442695, %v4623_v53  ;;  %v4644_v31 = vadd.f32 %v4414_v5, %v1566_v9  ;;  %vm944_vm2 = vweird.f32 %v4554_v29  ;;  %v4668_v9 = vpop.f32.mrf.mxu0 }
 0x16d   : > { %vm1947_vm3 = vweird.f32 %v4531_v23  ;;  %v1951_v55 = vand.u32 2147483647, %v4531_v23  ;;  %3177 = vrcp.f32 %v4626_v56  ;;  %v3176_v10 = vpop.eup %3175  ;;  %v1920_v26 = vsel %vm4633_vm15, %v4508_v22, %v1916_v33  ;;  %vm4674_vm4 = vmor %vm943_vm11, %vm944_vm2 }
 0x16e   : > { %v1935_v59 = vsel %vm4648_vm1, %v4548_v43, %v1931_v42  ;;  %v1953_v60 = vand.u32 2147483648, %v4531_v23  ;;  %3179 = vpow2.f32 %v2810_v30  ;;  %v942_v40 = vadd.f32 %v4554_v29, %v941_v16 }
 0x16f   : > { %v1945_v35 = vmul.f32 %v4578_v58, %v1944_v28  ;;  %v4665_v20 = vadd.f32 1.0, %v3176_v10  ;;  %v1246_v54 = vpack.c.bf16 %v1221_v0, %v4570_v34  ;;  %v957_v43 = vadd.f32 %v4586_v37, %v956_v46 }
 0x170   : > { %vm959_vm5 = vweird.f32 %v4586_v37  ;;  %3181 = vpow2.f32 %v2715_v24  ;;  %v2811_v19 = vmul.f32 -1.442695, %v4644_v31  ;;  %v1940_v34 = vsel %vm4606_vm12, %v1939_v17, %v1935_v59 }
 0x171   : > { %vm958_vm6 = vweird.f32 %v4533_v61  ;;  %v964_v18 = vand.u32 2147483648, %v4533_v61  ;;  %3183 = vrcp.f32 %v4665_v20  ;;  %v962_v21 = vand.u32 2147483647, %v4533_v61  ;;  %v1571_v38 = vpop.f32.mrf.mxu2 }
 0x172   : > { %3185 = vpow2.f32 %v2811_v19  ;;  %v4688_v6 = vadd.f32 %v4392_v51, %v565_v8  ;;  %v4691_v57 = vadd.f32 %v4414_v5, %v1569_v14  ;;  %v1925_v2 = vsel %vm4614_vm13, %v4565_v41, %v1920_v26  ;;  %vm4705_vm8 = vmor %vm958_vm6, %vm959_vm5  ;;  %1362 = vmatmul.bf16.gmra.mxu1 %v1246_v54 }
 0x173   : > { %v4693_v12 = vpop.eup %3177  ;;  %v946_v47 = vsel %vm4674_vm4, %v4554_v29, %v942_v40  ;;  %v1946_v32 = vadd.f32 %v4578_v58, %v1945_v35  ;;  %vm1948_vm7 = vweird.f32 %v4578_v58  ;;  %v2225_v11 = vmul.f32 %v1940_v34, %v4417_v63 }
 0x174   : > { %v3180_v8 = vpop.eup %3179  ;;  %v961_v41 = vsel %vm4705_vm8, %v4586_v37, %v957_v43  ;;  %v1958_v29 = vmul.f32 %v4693_v12, %v4626_v56  ;;  %v2716_v3 = vmul.f32 -1.442695, %v4688_v6  ;;  %vm4716_vm9 = vcmp.eq.f32.partialorder %v1951_v55, 8.507059e+37  ;;  %vm4726_vm10 = vmor %vm1947_vm3, %vm1948_vm7 }
 0x175   : > { %v965_v52 = vor.u32 1.1754944e-38, %v964_v18  ;;  %v4720_v7 = vadd.f32 1.0, %v3180_v8  ;;  %v2812_v33 = vmul.f32 -1.442695, %v4691_v57  ;;  %v2224_v63 = vmul.f32 %v1925_v2, %v4337_v62 }
 0x176   : > { %v3182_v25 = vpop.eup %3181  ;;  %vm963_vm11 = vcmp.eq.f32.partialorder %v962_v21, 8.507059e+37  ;;  %v1959_v17 = vsub.f32 1.0, %v1958_v29  ;;  %3187 = vpow2.f32 %v2716_v3  ;;  %v951_v44 = vsel %vm4637_vm0, %v950_v13, %v946_v47 }
 0x177   : > { %v4730_v48 = vpop.eup %3183  ;;  %v1950_v42 = vsel %vm4726_vm10, %v4578_v58, %v1946_v32  ;;  %v966_v16 = vsel %vm963_vm11, %v965_v52, %v961_v41  ;;  %3189 = vrcp.f32 %v4720_v7  ;;  %v4741_v28 = vadd.f32 1.0, %v3182_v25  ;;  %v570_v58 = vpop.f32.mrf.mxu0 }
 0x178   : > { %v3186_v62 = vpop.eup %3185  ;;  %v1960_v23 = vmul.f32 %v4693_v12, %v1959_v17  ;;  %v969_v0 = vmul.f32 %v4730_v48, %v4665_v20  ;;  %v2250_v30 = vpack.c.bf16 %v2225_v11, %v2224_v63  ;;  %vm1963_vm12 = vweird.f32 %v4693_v12 }
 0x179   : > { %v1968_v50 = vand.u32 2147483648, %v4626_v56  ;;  %v4745_v13 = vadd.f32 1.0, %v3186_v62  ;;  %3191 = vpow2.f32 %v2812_v33  ;;  %v1954_v46 = vor.u32 1.1754944e-38, %v1953_v60  ;;  %v1574_v49 = vpop.f32.mrf.mxu2 }
 0x17a   : > { %v1961_v24 = vadd.f32 %v4693_v12, %v1960_v23  ;;  %v970_v39 = vsub.f32 1.0, %v969_v0  ;;  %3193 = vrcp.f32 %v4741_v28  ;;  %v1223_v55 = vmul.f32 %v966_v16, %v4437_v4 }
 0x17b   : > { %vm1962_vm13 = vweird.f32 %v4626_v56  ;;  %v1966_v10 = vand.u32 2147483647, %v4626_v56  ;;  %3195 = vrcp.f32 %v4745_v13  ;;  %v1222_v59 = vmul.f32 %v951_v44, %v4420_v15  ;;  %2368 = vmatmul.bf16.gmra.mxu3 %v2250_v30 }
 0x17c   : > { %v3188_v26 = vpop.eup %3187  ;;  %v1955_v14 = vsel %vm4716_vm9, %v1954_v46, %v1950_v42  ;;  %vm4758_vm14 = vmor %vm1962_vm13, %vm1963_vm12  ;;  %v971_v4 = vmul.f32 %v4730_v48, %v970_v39  ;;  %v1969_v35 = vor.u32 1.1754944e-38, %v1968_v50  ;;  %v4772_v54 = vadd.f32 %v4392_v51, %v4668_v9  ;;  %v1333_v16 = vpop.f32.mrf.mxu1 }
 0x17d   : > { %v4763_v40 = vpop.eup %3189  ;;  %v1965_v56 = vsel %vm4758_vm14, %v4693_v12, %v1961_v24  ;;  %v4768_v15 = vadd.f32 1.0, %v3188_v26  ;;  %vm973_vm15 = vweird.f32 %v4665_v20  ;;  %vm974_vm0 = vweird.f32 %v4730_v48  ;;  %v4837_v26 = vld [vmem:[%s5909_s4] ss:$0 sm:$0xff] }
 0x17e   : > { %v977_v22 = vand.u32 2147483647, %v4665_v20  ;;  %v979_v43 = vand.u32 2147483648, %v4665_v20  ;;  %vm1967_vm1 = vcmp.eq.f32.partialorder %v1966_v10, 8.507059e+37  ;;  %v1247_v34 = vpack.c.bf16 %v1223_v55, %v1222_v59  ;;  %vm4787_vm2 = vmor %vm973_vm15, %vm974_vm0 }
 0x17f   : > { %v3192_v19 = vpop.eup %3191  ;;  %3197 = vrcp.f32 %v4768_v15  ;;  %v4780_v21 = vmul.f32 %v1955_v14, %v4434_v1  ;;  %v1970_v12 = vsel %vm1967_vm1, %v1969_v35, %v1965_v56  ;;  %v972_v9 = vadd.f32 %v4730_v48, %v971_v4  ;;  %v572_v37 = vpop.f32.mrf.mxu0 }
 0x180   : > { %v3194_v18 = vpop.eup %3193  ;;  %v1973_v2 = vmul.f32 %v4763_v40, %v4720_v7  ;;  %v4792_v61 = vadd.f32 1.0, %v3192_v19  ;;  %v2717_v8 = vmul.f32 -1.442695, %v4772_v54  ;;  %v4796_v1 = vadd.f32 %v4414_v5, %v1571_v38 }
 0x181   : > { %v4785_v47 = vpop.eup %3195  ;;  %v984_v20 = vmul.f32 %v3194_v18, %v4741_v28  ;;  %vm4798_vm3 = vcmp.eq.f32.partialorder %v977_v22, 8.507059e+37  ;;  %v980_v41 = vor.u32 1.1754944e-38, %v979_v43  ;;  %v4805_v3 = vadd.f32 %v4392_v51, %v570_v58 }
 0x182   : > { %v1988_v29 = vmul.f32 %v4785_v47, %v4745_v13  ;;  %v2227_v52 = vmul.f32 %v1970_v12, %v4536_v27  ;;  %v992_v25 = vand.u32 2147483647, %v4741_v28  ;;  %v994_v63 = vand.u32 2147483648, %v4741_v28  ;;  %1367 = vmatmul.bf16.gmra.mxu1 %v1247_v34 }
 0x183   : > { %v985_v33 = vsub.f32 1.0, %v984_v20  ;;  %v976_v17 = vsel %vm4787_vm2, %v4730_v48, %v972_v9  ;;  %v1974_v44 = vsub.f32 1.0, %v1973_v2  ;;  %3199 = vrcp.f32 %v4792_v61 }
 0x184   : > { %v1989_v42 = vsub.f32 1.0, %v1988_v29  ;;  %vm989_vm4 = vweird.f32 %v3194_v18  ;;  %3201 = vpow2.f32 %v2717_v8  ;;  %v2813_v27 = vmul.f32 -1.442695, %v4796_v1  ;;  %v4958_v8 = vld [vmem:[%s5909_s4 + $0x1] ss:$0 sm:$0xff] }
 0x185   : > { %v4814_v62 = vpop.eup %3197  ;;  %v986_v23 = vmul.f32 %v3194_v18, %v985_v33  ;;  %vm1977_vm5 = vweird.f32 %v4720_v7  ;;  %v1981_v0 = vand.u32 2147483647, %v4720_v7  ;;  %v1983_v30 = vand.u32 2147483648, %v4720_v7 }
 0x186   : > { %vm988_vm6 = vweird.f32 %v4741_v28  ;;  %v1990_v48 = vmul.f32 %v4785_v47, %v1989_v42  ;;  %vm993_vm7 = vcmp.eq.f32.partialorder %v992_v25, 8.507059e+37  ;;  %v995_v50 = vor.u32 1.1754944e-38, %v994_v63 }
 0x187   : > { %v987_v38 = vadd.f32 %v3194_v18, %v986_v23  ;;  %vm1992_vm8 = vweird.f32 %v4745_v13  ;;  %v981_v58 = vsel %vm4798_vm3, %v980_v41, %v976_v17  ;;  %v1975_v46 = vmul.f32 %v4763_v40, %v1974_v44  ;;  %vm990_vm9 = vmor %vm988_vm6, %vm989_vm4  ;;  %v575_v32 = vpop.f32.mrf.mxu0  ;;  %v1335_v41 = vpop.f32.mrf.mxu1 }
 0x188   : > { %v999_v24 = vmul.f32 %v4814_v62, %v4768_v15  ;;  %3203 = vpow2.f32 %v2813_v27  ;;  %v2718_v28 = vmul.f32 -1.442695, %v4805_v3  ;;  %v2251_v55 = vpack.c.bf16 %v2227_v52, %v4780_v21  ;;  %v1576_v21 = vpop.f32.mrf.mxu2 }
 0x189   : > { %v991_v39 = vsel %vm990_vm9, %v3194_v18, %v987_v38  ;;  %v4831_v10 = vadd.f32 %v4414_v5, %v1574_v49  ;;  %v4839_v59 = vpop.eup %3199  ;;  %v1991_v60 = vadd.f32 %v4785_v47, %v1990_v48  ;;  %vm1993_vm10 = vweird.f32 %v4785_v47 }
 0x18a   : > { %v996_v14 = vsel %vm993_vm7, %v995_v50, %v991_v39  ;;  %v1996_v4 = vand.u32 2147483647, %v4745_v13  ;;  %v3202_v56 = vpop.eup %3201  ;;  %vm1978_vm11 = vweird.f32 %v4763_v40  ;;  %v1998_v22 = vand.u32 2147483648, %v4745_v13  ;;  %vm4853_vm12 = vmor %vm1992_vm8, %vm1993_vm10 }
 0x18b   : > { %v1225_v35 = vmul.f32 %v996_v14, %v4623_v53  ;;  %3205 = vpow2.f32 %v2718_v28  ;;  %v1224_v43 = vmul.f32 %v981_v58, %v4561_v45  ;;  %v1976_v19 = vadd.f32 %v4763_v40, %v1975_v46  ;;  %2373 = vmatmul.bf16.gmra.mxu3 %v2251_v55  ;;  %vm4876_vm14 = vmor %vm1977_vm5, %vm1978_vm11 }
 0x18c   : > { %v1000_v34 = vsub.f32 1.0, %v999_v24  ;;  %v4849_v18 = vadd.f32 1.0, %v3202_v56  ;;  %v2003_v53 = vmul.f32 %v4839_v59, %v4792_v61  ;;  %v2814_v9 = vmul.f32 -1.442695, %v4831_v10 }
 0x18d   : > { %v4861_v45 = vadd.f32 %v4392_v51, %v572_v37  ;;  %v1334_v2 = vadd.f32 %v4837_v26, %v1333_v16  ;;  %vm4864_vm13 = vcmp.eq.f32.partialorder %v1981_v0, 8.507059e+37  ;;  %v1984_v13 = vor.u32 1.1754944e-38, %v1983_v30  ;;  %v2339_v0 = vpop.f32.mrf.mxu3 }
 0x18e   : > { %v3204_v20 = vpop.eup %3203  ;;  %v1995_v11 = vsel %vm4853_vm12, %v4785_v47, %v1991_v60  ;;  %3207 = vrcp.f32 %v4849_v18  ;;  %vm1997_vm15 = vcmp.eq.f32.partialorder %v1996_v4, 8.507059e+37  ;;  %v1999_v49 = vor.u32 1.1754944e-38, %v1998_v22 }
 0x18f   : > { %v4880_v52 = vadd.f32 1.0, %v3204_v20  ;;  %1413 = vst [vmem:[%s4884_s28] sm:$0xff] %v1334_v2  ;;  %v1248_v47 = vpack.c.bf16 %v1225_v35, %v1224_v43  ;;  %v1980_v33 = vsel %vm4876_vm14, %v4763_v40, %v1976_v19  ;;  %v1007_v7 = vand.u32 2147483647, %v4768_v15  ;;  %v4942_v19 = vpop.f32.mrf.mxu1 }
 0x190   : > { %3209 = vpow2.f32 %v2814_v9  ;;  %v2719_v25 = vmul.f32 -1.442695, %v4861_v45  ;;  %v2000_v37 = vsel %vm1997_vm15, %v1999_v49, %v1995_v11  ;;  %v1001_v17 = vmul.f32 %v4814_v62, %v1000_v34  ;;  %v1579_v60 = vpop.f32.mrf.mxu2 }
 0x191   : > { %v3206_v63 = vpop.eup %3205  ;;  %v2004_v44 = vsub.f32 1.0, %v2003_v53  ;;  %3211 = vrcp.f32 %v4880_v52  ;;  %vm1003_vm0 = vweird.f32 %v4768_v15  ;;  %vm1004_vm1 = vweird.f32 %v4814_v62 }
 0x192   : > { %v1009_v42 = vand.u32 2147483648, %v4768_v15  ;;  %v4897_v16 = vadd.f32 1.0, %v3206_v63  ;;  %v1985_v40 = vsel %vm4864_vm13, %v1984_v13, %v1980_v33  ;;  %3213 = vpow2.f32 %v2719_v25  ;;  %1372 = vmatmul.bf16.gmra.mxu1 %v1248_v47  ;;  %vm4924_vm3 = vmor %vm1003_vm0, %vm1004_vm1  ;;  %v4936_v15 = vpop.f32.mrf.mxu0 }
 0x193   : > { %v4902_v23 = vadd.f32 %v4414_v5, %v1576_v21  ;;  %v4905_v27 = vadd.f32 %v4392_v51, %v575_v32  ;;  %v2229_v48 = vmul.f32 %v2000_v37, %v4644_v31  ;;  %v1002_v38 = vadd.f32 %v4814_v62, %v1001_v17 }
 0x194   : > { %v4907_v30 = vpop.eup %3207  ;;  %3215 = vrcp.f32 %v4897_v16  ;;  %vm4912_vm2 = vcmp.eq.f32.partialorder %v1007_v7, 8.507059e+37  ;;  %v2005_v58 = vmul.f32 %v4839_v59, %v2004_v44  ;;  %v2228_v39 = vmul.f32 %v1985_v40, %v4612_v36 }
 0x195   : > { %v1014_v46 = vmul.f32 %v4907_v30, %v4849_v18  ;;  %v2815_v28 = vmul.f32 -1.442695, %v4902_v23  ;;  %v2720_v55 = vmul.f32 -1.442695, %v4905_v27  ;;  %v1336_v14 = vadd.f32 %v4837_v26, %v1335_v41 }
 0x196   : > { %v3210_v24 = vpop.eup %3209  ;;  %v1010_v56 = vor.u32 1.1754944e-38, %v1009_v42  ;;  %vm2007_vm4 = vweird.f32 %v4792_v61  ;;  %vm2008_vm5 = vweird.f32 %v4839_v59  ;;  %v2252_v43 = vpack.c.bf16 %v2229_v48, %v2228_v39 }
 0x197   : > { %v4931_v4 = vpop.eup %3211  ;;  %v1015_v36 = vsub.f32 1.0, %v1014_v46  ;;  %v4934_v35 = vadd.f32 1.0, %v3210_v24  ;;  %3217 = vpow2.f32 %v2815_v28  ;;  %1414 = vst [vmem:[%s4884_s28 + $0x8] sm:$0xff] %v1336_v14  ;;  %v1006_v21 = vsel %vm4924_vm3, %v4814_v62, %v1002_v38  ;;  %vm4968_vm7 = vmor %vm2007_vm4, %vm2008_vm5 }
 0x198   : > { %v2018_v22 = vmul.f32 %v4931_v4, %v4880_v52  ;;  %v3214_v34 = vpop.eup %3213  ;;  %v2006_v12 = vadd.f32 %v4839_v59, %v2005_v58  ;;  %v1024_v9 = vand.u32 2147483648, %v4849_v18  ;;  %vm1019_vm6 = vweird.f32 %v4907_v30 }
 0x199   : > { %v1016_v53 = vmul.f32 %v4907_v30, %v1015_v36  ;;  %v4953_v20 = vadd.f32 1.0, %v3214_v34  ;;  %3219 = vpow2.f32 %v2720_v55  ;;  %v2011_v62 = vand.u32 2147483647, %v4792_v61 }
 0x19a   : > { %v4950_v2 = vpop.eup %3215  ;;  %v2019_v32 = vsub.f32 1.0, %v2018_v22  ;;  %v2013_v13 = vand.u32 2147483648, %v4792_v61  ;;  %3221 = vrcp.f32 %v4934_v35  ;;  %vm1018_vm8 = vweird.f32 %v4849_v18  ;;  %v580_v39 = vpop.f32.mrf.mxu0 }
 0x19b   : > { %v1017_v11 = vadd.f32 %v4907_v30, %v1016_v53  ;;  %v1022_v29 = vand.u32 2147483647, %v4849_v18  ;;  %3223 = vrcp.f32 %v4953_v20  ;;  %2378 = vmatmul.bf16.gmra.mxu3 %v2252_v43  ;;  %v1011_v47 = vsel %vm4912_vm2, %v1010_v56, %v1006_v21  ;;  %vm4980_vm9 = vmor %vm1018_vm8, %vm1019_vm6  ;;  %v4986_v18 = vpop.f32.mrf.mxu3 }
 0x19c   : > { %v2020_v49 = vmul.f32 %v4931_v4, %v2019_v32  ;;  %v1025_v33 = vor.u32 1.1754944e-38, %v1024_v9  ;;  %v1029_v7 = vmul.f32 %v4950_v2, %v4897_v16  ;;  %v2010_v63 = vsel %vm4968_vm7, %v4839_v59, %v2006_v12 }
 0x19d   : > { %v3218_v25 = vpop.eup %3217  ;;  %v1021_v37 = vsel %vm4980_vm9, %v4907_v30, %v1017_v11  ;;  %v2026_v17 = vand.u32 2147483647, %v4880_v52  ;;  %v2340_v44 = vadd.f32 %v4958_v8, %v2339_v0  ;;  %vm2023_vm10 = vweird.f32 %v4931_v4  ;;  %v1581_v30 = vpop.f32.mrf.mxu2 }
 0x19e   : > { %v2021_v42 = vadd.f32 %v4931_v4, %v2020_v49  ;;  %v2028_v40 = vand.u32 2147483648, %v4880_v52  ;;  %v5000_v48 = vadd.f32 %v4414_v5, %v1579_v60  ;;  %vm2012_vm11 = vcmp.eq.f32.partialorder %v2011_v62, 8.507059e+37 }
 0x19f   : > { %v3220_v38 = vpop.eup %3219  ;;  %v2014_v59 = vor.u32 1.1754944e-38, %v2013_v13  ;;  %vm1023_vm12 = vcmp.eq.f32.partialorder %v1022_v29, 8.507059e+37  ;;  %v5002_v50 = vadd.f32 1.0, %v3218_v25  ;;  %2859 = vst [vmem:[%s4884_s28 + $0x100] sm:$0xff] %v2340_v44  ;;  %v1226_v0 = vmul.f32 %v1011_v47, %v4688_v6 }
 0x1a0   : > { %v5005_v58 = vpop.eup %3221  ;;  %v1026_v46 = vsel %vm1023_vm12, %v1025_v33, %v1021_v37  ;;  %vm2022_vm13 = vweird.f32 %v4880_v52  ;;  %v1030_v24 = vsub.f32 1.0, %v1029_v7  ;;  %vm5017_vm15 = vcmp.eq.f32.partialorder %v2026_v17, 8.507059e+37  ;;  %v1340_v52 = vpop.f32.mrf.mxu1 }
 0x1a1   : > { %v5009_v31 = vpop.eup %3223  ;;  %v2015_v28 = vsel %vm2012_vm11, %v2014_v59, %v2010_v63  ;;  %vm5013_vm14 = vmor %vm2022_vm13, %vm2023_vm10  ;;  %3225 = vrcp.f32 %v5002_v50  ;;  %v5022_v6 = vadd.f32 1.0, %v3220_v38  ;;  %v2029_v56 = vor.u32 1.1754944e-38, %v2028_v40 }
 0x1a2   : > { %v2025_v60 = vsel %vm5013_vm14, %v4931_v4, %v2021_v42  ;;  %v1044_v36 = vmul.f32 %v5009_v31, %v4953_v20  ;;  %v2816_v22 = vmul.f32 -1.442695, %v5000_v48  ;;  %v1227_v43 = vmul.f32 %v1026_v46, %v4772_v54  ;;  %v582_v40 = vpop.f32.mrf.mxu0 }
 0x1a3   : > { %vm1033_vm0 = vweird.f32 %v4897_v16  ;;  %v1037_v34 = vand.u32 2147483647, %v4897_v16  ;;  %v1039_v21 = vand.u32 2147483648, %v4897_v16  ;;  %v1031_v12 = vmul.f32 %v4950_v2, %v1030_v24  ;;  %v2344_v41 = vpop.f32.mrf.mxu3 }
 0x1a4   : > { %vm1034_vm1 = vweird.f32 %v4950_v2  ;;  %v2033_v4 = vmul.f32 %v5005_v58, %v4934_v35  ;;  %v1045_v53 = vsub.f32 1.0, %v1044_v36  ;;  %v2030_v9 = vsel %vm5017_vm15, %v2029_v56, %v2025_v60 }
 0x1a5   : > { %v1052_v32 = vand.u32 2147483647, %v4953_v20  ;;  %v1054_v54 = vand.u32 2147483648, %v4953_v20  ;;  %3227 = vrcp.f32 %v5022_v6  ;;  %v5046_v13 = vadd.f32 %v4392_v51, %v4936_v15  ;;  %vm5065_vm4 = vmor %vm1033_vm0, %vm1034_vm1  ;;  %v1584_v17 = vpop.f32.mrf.mxu2 }
 0x1a6   : > { %v1046_v62 = vmul.f32 %v5009_v31, %v1045_v53  ;;  %3229 = vpow2.f32 %v2816_v22  ;;  %v1339_v11 = vadd.f32 %v4837_v26, %v4942_v19  ;;  %v2230_v49 = vmul.f32 %v2015_v28, %v4691_v57  ;;  %v5129_v53 = vld [vmem:[#allocation7] ss:$0 sm:$0xff] }
 0x1a7   : > { %v5050_v29 = vpop.eup %3225  ;;  %vm1048_vm2 = vweird.f32 %v4953_v20  ;;  %vm1049_vm3 = vweird.f32 %v5009_v31  ;;  %v1249_v47 = vpack.c.bf16 %v1227_v43, %v1226_v0  ;;  %v1032_v61 = vadd.f32 %v4950_v2, %v1031_v12 }
 0x1a8   : > { %v2034_v33 = vsub.f32 1.0, %v2033_v4  ;;  %v1047_v7 = vadd.f32 %v5009_v31, %v1046_v62  ;;  %v2048_v15 = vmul.f32 %v5050_v29, %v5002_v50  ;;  %1415 = vst [vmem:[%s4884_s28 + $0x10] sm:$0xff] %v1339_v11  ;;  %v2231_v19 = vmul.f32 %v2030_v9, %v4796_v1  ;;  %vm5083_vm6 = vmor %vm1048_vm2, %vm1049_vm3  ;;  %v1343_v0 = vpop.f32.mrf.mxu1 }
 0x1a9   : > { %v2721_v25 = vmul.f32 -1.442695, %v5046_v13  ;;  %1377 = vmatmul.bf16.gmra.mxu1 %v1249_v47  ;;  %v2342_v63 = vadd.f32 %v4958_v8, %v4986_v18  ;;  %v5073_v37 = vadd.f32 %v4414_v5, %v1581_v30  ;;  %vm5075_vm5 = vcmp.eq.f32.partialorder %v1037_v34, 8.507059e+37 }
 0x1aa   : > { %v1040_v16 = vor.u32 1.1754944e-38, %v1039_v21  ;;  %vm5087_vm7 = vcmp.eq.f32.partialorder %v1052_v32, 8.507059e+37  ;;  %v1055_v18 = vor.u32 1.1754944e-38, %v1054_v54  ;;  %v1051_v59 = vsel %vm5083_vm6, %v5009_v31, %v1047_v7 }
 0x1ab   : > { %v5091_v38 = vpop.eup %3227  ;;  %3231 = vpow2.f32 %v2721_v25  ;;  %2860 = vst [vmem:[%s4884_s28 + $0x108] sm:$0xff] %v2342_v63  ;;  %v2817_v20 = vmul.f32 -1.442695, %v5073_v37  ;;  %v5099_v30 = vadd.f32 %v4392_v51, %v580_v39  ;;  %v1036_v24 = vsel %vm5065_vm4, %v4950_v2, %v1032_v61  ;;  %v2346_v21 = vpop.f32.mrf.mxu3 }
 0x1ac   : > { %v3230_v46 = vpop.eup %3229  ;;  %v2035_v28 = vmul.f32 %v5005_v58, %v2034_v33  ;;  %v2049_v55 = vsub.f32 1.0, %v2048_v15  ;;  %v1341_v14 = vadd.f32 %v4837_v26, %v1340_v52  ;;  %v2253_v56 = vpack.c.bf16 %v2231_v19, %v2230_v49  ;;  %v585_v15 = vpop.f32.mrf.mxu0 }
 0x1ad   : > { %v5106_v31 = vadd.f32 1.0, %v3230_v46  ;;  %3233 = vpow2.f32 %v2817_v20  ;;  %v2722_v60 = vmul.f32 -1.442695, %v5099_v30  ;;  %v1056_v51 = vsel %vm5087_vm7, %v1055_v18, %v1051_v59  ;;  %v1586_v61 = vpop.f32.mrf.mxu2  ;;  %v5174_v20 = vld [vmem:[#allocation7 + $0x1] ss:$0 sm:$0xff] }
 0x1ae   : > { %v1059_v39 = vmul.f32 %v5091_v38, %v5022_v6  ;;  %1416 = vst [vmem:[%s4884_s28 + $0x18] sm:$0xff] %v1341_v14  ;;  %v2345_v2 = vadd.f32 %v4958_v8, %v2344_v41  ;;  %v5116_v36 = vadd.f32 %v4414_v5, %v1584_v17  ;;  %vm2037_vm8 = vweird.f32 %v4934_v35  ;;  %2383 = vmatmul.bf16.gmra.mxu3 %v2253_v56 }
 0x1af   : > { %v2041_v52 = vand.u32 2147483647, %v4934_v35  ;;  %3235 = vrcp.f32 %v5106_v31  ;;  %v1041_v22 = vsel %vm5075_vm5, %v1040_v16, %v1036_v24  ;;  %v2043_v43 = vand.u32 2147483648, %v4934_v35 }
 0x1b0   : > { %3237 = vpow2.f32 %v2722_v60  ;;  %2861 = vst [vmem:[%s4884_s28 + $0x110] sm:$0xff] %v2345_v2  ;;  %v2818_v34 = vmul.f32 -1.442695, %v5116_v36  ;;  %v2036_v5 = vadd.f32 %v5005_v58, %v2035_v28  ;;  %vm2038_vm9 = vweird.f32 %v5005_v58  ;;  %v1345_v17 = vpop.f32.mrf.mxu1 }
 0x1b1   : > { %v3232_v12 = vpop.eup %3231  ;;  %v1229_v4 = vmul.f32 %v1056_v51, %v4861_v45  ;;  %v5132_v9 = vadd.f32 %v5129_v53, %v582_v40  ;;  %v2050_v32 = vmul.f32 %v5050_v29, %v2049_v55  ;;  %v1060_v54 = vsub.f32 1.0, %v1059_v39  ;;  %vm5146_vm11 = vmor %vm2037_vm8, %vm2038_vm9 }
 0x1b2   : > { %v5135_v62 = vadd.f32 1.0, %v3232_v12  ;;  %3239 = vpow2.f32 %v2818_v34  ;;  %v1228_v41 = vmul.f32 %v1041_v22, %v4805_v3  ;;  %vm5138_vm10 = vcmp.eq.f32.partialorder %v2041_v52, 8.507059e+37 }
 0x1b3   : > { %v3234_v11 = vpop.eup %3233  ;;  %v2723_v45 = vmul.f32 -1.442695, %v5132_v9  ;;  %v1344_v47 = vadd.f32 %v4837_v26, %v1343_v0  ;;  %v2044_v7 = vor.u32 1.1754944e-38, %v2043_v43  ;;  %vm2052_vm12 = vweird.f32 %v5002_v50  ;;  %v2349_v39 = vpop.f32.mrf.mxu3 }
 0x1b4   : > { %v2056_v3 = vand.u32 2147483647, %v5002_v50  ;;  %3241 = vrcp.f32 %v5135_v62  ;;  %v2040_v57 = vsel %vm5146_vm11, %v5005_v58, %v2036_v5  ;;  %v5158_v35 = vadd.f32 1.0, %v3234_v11 }
 0x1b5   : > { %v5153_v19 = vpop.eup %3235  ;;  %1417 = vst [vmem:[%s4884_s28 + $0x20] sm:$0xff] %v1344_v47  ;;  %v1250_v25 = vpack.c.bf16 %v1229_v4, %v1228_v41  ;;  %v2347_v63 = vadd.f32 %v4958_v8, %v2346_v21  ;;  %v2051_v16 = vadd.f32 %v5050_v29, %v2050_v32  ;;  %vm2053_vm13 = vweird.f32 %v5050_v29  ;;  %v1589_v41 = vpop.f32.mrf.mxu2 }
 0x1b6   : > { %v3238_v1 = vpop.eup %3237  ;;  %v1061_v44 = vmul.f32 %v5091_v38, %v1060_v54  ;;  %3243 = vpow2.f32 %v2723_v45  ;;  %v2058_v42 = vand.u32 2147483648, %v5002_v50  ;;  %vm1063_vm14 = vweird.f32 %v5022_v6  ;;  %vm5185_vm0 = vmor %vm2052_vm12, %vm2053_vm13  ;;  %v5236_v47 = vpop.f32.mrf.mxu0 }
 0x1b7   : > { %v1067_v58 = vand.u32 2147483647, %v5022_v6  ;;  %3245 = vrcp.f32 %v5158_v35  ;;  %2862 = vst [vmem:[%s4884_s28 + $0x118] sm:$0xff] %v2347_v63  ;;  %vm1064_vm15 = vweird.f32 %v5091_v38  ;;  %v1069_v40 = vand.u32 2147483648, %v5022_v6 }
 0x1b8   : > { %v3240_v18 = vpop.eup %3239  ;;  %v5172_v59 = vadd.f32 1.0, %v3238_v1  ;;  %v5177_v0 = vadd.f32 %v5174_v20, %v1586_v61  ;;  %v2045_v46 = vsel %vm5138_vm10, %v2044_v7, %v2040_v57  ;;  %v2063_v28 = vmul.f32 %v5153_v19, %v5106_v31  ;;  %vm5206_vm2 = vmor %vm1063_vm14, %vm1064_vm15 }
 0x1b9   : > { %v2073_v55 = vand.u32 2147483648, %v5106_v31  ;;  %1382 = vmatmul.bf16.gmra.mxu1 %v1250_v25  ;;  %v1346_v14 = vadd.f32 %v4837_v26, %v1345_v17  ;;  %v2055_v56 = vsel %vm5185_vm0, %v5050_v29, %v2051_v16  ;;  %v1062_v50 = vadd.f32 %v5091_v38, %v1061_v44 }
 0x1ba   : > { %v5193_v60 = vpop.eup %3241  ;;  %3247 = vrcp.f32 %v5172_v59  ;;  %v5200_v51 = vadd.f32 1.0, %v3240_v18  ;;  %vm2057_vm1 = vcmp.eq.f32.partialorder %v2056_v3, 8.507059e+37  ;;  %v2059_v2 = vor.u32 1.1754944e-38, %v2058_v42 }
 0x1bb   : > { %vm5210_vm3 = vcmp.eq.f32.partialorder %v1067_v58, 8.507059e+37  ;;  %v1074_v29 = vmul.f32 %v5193_v60, %v5135_v62  ;;  %1418 = vst [vmem:[%s4884_s28 + $0x28] sm:$0xff] %v1346_v14  ;;  %v5218_v34 = vmul.f32 %v2045_v46, %v4831_v10  ;;  %v1070_v21 = vor.u32 1.1754944e-38, %v1069_v40  ;;  %v2351_v14 = vpop.f32.mrf.mxu3 }
 0x1bc   : > { %v3244_v43 = vpop.eup %3243  ;;  %v2071_v12 = vand.u32 2147483647, %v5106_v31  ;;  %v2819_v6 = vmul.f32 -1.442695, %v5177_v0  ;;  %v2060_v4 = vsel %vm2057_vm1, %v2059_v2, %v2055_v56  ;;  %v2064_v32 = vsub.f32 1.0, %v2063_v28 }
 0x1bd   : > { %v5222_v5 = vpop.eup %3245  ;;  %v1075_v54 = vsub.f32 1.0, %v1074_v29  ;;  %v5225_v11 = vadd.f32 %v5129_v53, %v585_v15  ;;  %v1066_v49 = vsel %vm5206_vm2, %v5091_v38, %v1062_v50  ;;  %vm2067_vm4 = vweird.f32 %v5106_v31 }
 0x1be   : > { %v5231_v10 = vor.u32 1.1754944e-38, %v2073_v55  ;;  %v2078_v45 = vmul.f32 %v5222_v5, %v5158_v35  ;;  %3249 = vrcp.f32 %v5200_v51  ;;  %v1082_v33 = vand.u32 2147483647, %v5135_v62 }
 0x1bf   : > { %v1076_v61 = vmul.f32 %v5193_v60, %v1075_v54  ;;  %v1084_v7 = vand.u32 2147483648, %v5135_v62  ;;  %v5241_v3 = vadd.f32 1.0, %v3244_v43  ;;  %v5243_v38 = vpop.f32.mrf.mxu1  ;;  %v2233_v57 = vmul.f32 %v2060_v4, %v4902_v23  ;;  %v1591_v4 = vpop.f32.mrf.mxu2 }
 0x1c0   : > { %v5245_v15 = vpop.eup %3247  ;;  %vm1079_vm5 = vweird.f32 %v5193_v60  ;;  %v2079_v25 = vsub.f32 1.0, %v2078_v45  ;;  %3251 = vpow2.f32 %v2819_v6  ;;  %v2065_v63 = vmul.f32 %v5153_v19, %v2064_v32 }
 0x1c1   : > { %v1077_v17 = vadd.f32 %v5193_v60, %v1076_v61  ;;  %3253 = vrcp.f32 %v5241_v3  ;;  %v2724_v1 = vmul.f32 -1.442695, %v5225_v11  ;;  %v1071_v16 = vsel %vm5210_vm3, %v1070_v21, %v1066_v49 }
 0x1c2   : > { %vm1078_vm6 = vweird.f32 %v5135_v62  ;;  %v2080_v44 = vmul.f32 %v5222_v5, %v2079_v25  ;;  %v1089_v23 = vmul.f32 %v5245_v15, %v5172_v59  ;;  %vm2068_vm7 = vweird.f32 %v5153_v19 }
 0x1c3   : > { %vm5260_vm8 = vcmp.eq.f32.partialorder %v2071_v12, 8.507059e+37  ;;  %vm5264_vm9 = vmor %vm1078_vm6, %vm1079_vm5  ;;  %vm5268_vm10 = vcmp.eq.f32.partialorder %v1082_v33, 8.507059e+37  ;;  %v1085_v62 = vor.u32 1.1754944e-38, %v1084_v7  ;;  %vm2082_vm11 = vweird.f32 %v5158_v35 }
 0x1c4   : > { %v5273_v40 = vpop.eup %3249  ;;  %v1081_v46 = vsel %vm5264_vm9, %v5193_v60, %v1077_v17  ;;  %v2086_v24 = vand.u32 2147483647, %v5158_v35  ;;  %v2088_v28 = vand.u32 2147483648, %v5158_v35  ;;  %v1097_v55 = vand.u32 2147483647, %v5172_v59  ;;  %vm5295_vm13 = vmor %vm2067_vm4, %vm2068_vm7 }
 0x1c5   : > { %v2066_v56 = vadd.f32 %v5153_v19, %v2065_v63  ;;  %v2081_v50 = vadd.f32 %v5222_v5, %v2080_v44  ;;  %vm2083_vm12 = vweird.f32 %v5222_v5  ;;  %3255 = vpow2.f32 %v2724_v1 }
 0x1c6   : > { %v3252_v2 = vpop.eup %3251  ;;  %v1090_v52 = vsub.f32 1.0, %v1089_v23  ;;  %v2254_v22 = vpack.c.bf16 %v2233_v57, %v5218_v34  ;;  %v2350_v60 = vadd.f32 %v4958_v8, %v2349_v39  ;;  %v5287_v29 = vadd.f32 %v5174_v20, %v1589_v41  ;;  %vm5313_vm14 = vmor %vm2082_vm11, %vm2083_vm12 }
 0x1c7   : > { %v5289_v43 = vpop.eup %3253  ;;  %v1086_v12 = vsel %vm5268_vm10, %v1085_v62, %v1081_v46  ;;  %v1099_v34 = vand.u32 2147483648, %v5172_v59  ;;  %v2093_v39 = vmul.f32 %v5273_v40, %v5200_v51  ;;  %v5304_v6 = vadd.f32 1.0, %v3252_v2  ;;  %v5306_v32 = vpop.f32.mrf.mxu1 }
 0x1c8   : > { %v1230_v54 = vmul.f32 %v1071_v16, %v4905_v27  ;;  %vm5317_vm15 = vcmp.eq.f32.partialorder %v2086_v24, 8.507059e+37  ;;  %v1104_v49 = vmul.f32 %v5289_v43, %v5241_v3  ;;  %2388 = vmatmul.bf16.gmra.mxu3 %v2254_v22  ;;  %2863 = vst [vmem:[%s4884_s28 + $0x120] sm:$0xff] %v2350_v60  ;;  %v2820_v45 = vmul.f32 -1.442695, %v5287_v29  ;;  %v590_v27 = vpop.f32.mrf.mxu0  ;;  %v1594_v60 = vpop.f32.mrf.mxu2 }
 0x1c9   : > { %v2070_v35 = vsel %vm5295_vm13, %v5153_v19, %v2066_v56  ;;  %v2085_v61 = vsel %vm5313_vm14, %v5222_v5, %v2081_v50  ;;  %v2089_v33 = vor.u32 1.1754944e-38, %v2088_v28  ;;  %3257 = vrcp.f32 %v5304_v6 }
 0x1ca   : > { %v1231_v7 = vmul.f32 %v1086_v12, %v5046_v13  ;;  %v1091_v57 = vmul.f32 %v5245_v15, %v1090_v52  ;;  %vm1093_vm0 = vweird.f32 %v5172_v59  ;;  %v1105_v25 = vsub.f32 1.0, %v1104_v49 }
 0x1cb   : > { %v3256_v63 = vpop.eup %3255  ;;  %vm5335_vm1 = vcmp.eq.f32.partialorder %v1097_v55, 8.507059e+37  ;;  %v1100_v19 = vor.u32 1.1754944e-38, %v1099_v34  ;;  %v2094_v1 = vsub.f32 1.0, %v2093_v39  ;;  %3259 = vpow2.f32 %v2820_v45 }
 0x1cc   : > { %v5341_v5 = vadd.f32 %v5129_v53, %v5236_v47  ;;  %v2075_v13 = vsel %vm5260_vm8, %v5231_v10, %v2070_v35  ;;  %v2090_v16 = vsel %vm5317_vm15, %v2089_v33, %v2085_v61  ;;  %vm1094_vm2 = vweird.f32 %v5245_v15 }
 0x1cd   : > { %v1106_v44 = vmul.f32 %v5289_v43, %v1105_v25  ;;  %v2103_v23 = vand.u32 2147483648, %v5200_v51  ;;  %v5351_v58 = vadd.f32 1.0, %v3256_v63  ;;  %v1349_v47 = vadd.f32 %v4837_v26, %v5243_v38  ;;  %vm5370_vm4 = vmor %vm1093_vm0, %vm1094_vm2 }
 0x1ce   : > { %v2725_v18 = vmul.f32 -1.442695, %v5341_v5  ;;  %v1092_v42 = vadd.f32 %v5245_v15, %v1091_v57  ;;  %vm2097_vm3 = vweird.f32 %v5200_v51  ;;  %v1251_v10 = vpack.c.bf16 %v1231_v7, %v1230_v54  ;;  %v2354_v24 = vpop.f32.mrf.mxu3 }
 0x1cf   : > { %v2352_v62 = vadd.f32 %v4958_v8, %v2351_v14  ;;  %v5360_v46 = vadd.f32 %v5174_v20, %v1591_v4  ;;  %v5362_v28 = vpop.eup %3257  ;;  %v2234_v55 = vmul.f32 %v2075_v13, %v5000_v48  ;;  %v2235_v56 = vmul.f32 %v2090_v16, %v5073_v37  ;;  %1419 = vst [vmem:[%s4884_s28 + $0x30] sm:$0xff] %v1349_v47  ;;  %v1353_v50 = vpop.f32.mrf.mxu1 }
 0x1d0   : > { %v2095_v14 = vmul.f32 %v5273_v40, %v2094_v1  ;;  %3261 = vrcp.f32 %v5351_v58  ;;  %v1107_v2 = vadd.f32 %v5289_v43, %v1106_v44  ;;  %vm1109_vm5 = vweird.f32 %v5289_v43  ;;  %1387 = vmatmul.bf16.gmra.mxu1 %v1251_v10  ;;  %v592_v39 = vpop.f32.mrf.mxu0 }
 0x1d1   : > { %v2108_v48 = vmul.f32 %v5362_v28, %v5304_v6  ;;  %3263 = vpow2.f32 %v2725_v18  ;;  %2864 = vst [vmem:[%s4884_s28 + $0x128] sm:$0xff] %v2352_v62  ;;  %v3260_v37 = vpop.eup %3259  ;;  %vm1108_vm6 = vweird.f32 %v5241_v3  ;;  %v1112_v59 = vand.u32 2147483647, %v5241_v3 }
 0x1d2   : > { %v1114_v52 = vand.u32 2147483648, %v5241_v3  ;;  %v2821_v22 = vmul.f32 -1.442695, %v5360_v46  ;;  %v1096_v21 = vsel %vm5370_vm4, %v5245_v15, %v1092_v42  ;;  %vm2098_vm7 = vweird.f32 %v5273_v40  ;;  %vm5398_vm8 = vmor %vm1108_vm6, %vm1109_vm5 }
 0x1d3   : > { %v5390_v12 = vadd.f32 1.0, %v3260_v37  ;;  %v5393_v34 = vadd.f32 %v5129_v53, %v590_v27  ;;  %v2096_v4 = vadd.f32 %v5273_v40, %v2095_v14  ;;  %v1351_v15 = vadd.f32 %v4837_v26, %v5306_v32  ;;  %vm5429_vm10 = vmor %vm2097_vm3, %vm2098_vm7 }
 0x1d4   : > { %3265 = vpow2.f32 %v2821_v22  ;;  %v2355_v54 = vadd.f32 %v4958_v8, %v2354_v24  ;;  %v1111_v31 = vsel %vm5398_vm8, %v5289_v43, %v1107_v2  ;;  %v2109_v41 = vsub.f32 1.0, %v2108_v48 }
 0x1d5   : > { %3267 = vrcp.f32 %v5390_v12  ;;  %v2255_v49 = vpack.c.bf16 %v2235_v56, %v2234_v55  ;;  %v1115_v27 = vor.u32 1.1754944e-38, %v1114_v52  ;;  %v2726_v35 = vmul.f32 -1.442695, %v5393_v34  ;;  %1420 = vst [vmem:[%s4884_s28 + $0x38] sm:$0xff] %v1351_v15 }
 0x1d6   : > { %v5409_v45 = vpop.eup %3261  ;;  %v5414_v61 = vadd.f32 %v5174_v20, %v1594_v60  ;;  %v5417_v32 = vadd.f32 %v5129_v53, %v592_v39  ;;  %v1101_v43 = vsel %vm5335_vm1, %v1100_v19, %v1096_v21  ;;  %v2101_v7 = vand.u32 2147483647, %v5200_v51  ;;  %2865 = vst [vmem:[%s4884_s28 + $0x130] sm:$0xff] %v2355_v54  ;;  %v2356_v25 = vpop.f32.mrf.mxu3 }
 0x1d7   : > { %v3264_v33 = vpop.eup %3263  ;;  %vm1113_vm9 = vcmp.eq.f32.partialorder %v1112_v59, 8.507059e+37  ;;  %v1119_v57 = vmul.f32 %v5409_v45, %v5351_v58  ;;  %3269 = vpow2.f32 %v2726_v35  ;;  %v5436_v19 = vpop.f32.mrf.mxu1  ;;  %v2100_v16 = vsel %vm5429_vm10, %v5273_v40, %v2096_v4 }
 0x1d8   : > { %v1116_v1 = vsel %vm1113_vm9, %v1115_v27, %v1111_v31  ;;  %v5433_v13 = vadd.f32 1.0, %v3264_v33  ;;  %v2822_v17 = vmul.f32 -1.442695, %v5414_v61  ;;  %v2110_v44 = vmul.f32 %v5362_v28, %v2109_v41  ;;  %2393 = vmatmul.bf16.gmra.mxu3 %v2255_v49  ;;  %v595_v33 = vpop.f32.mrf.mxu0 }
 0x1d9   : > { %v2116_v18 = vand.u32 2147483647, %v5304_v6  ;;  %v1354_v47 = vadd.f32 %v4837_v26, %v1353_v50  ;;  %v2104_v10 = vor.u32 1.1754944e-38, %v2103_v23  ;;  %v1120_v62 = vsub.f32 1.0, %v1119_v57  ;;  %v1596_v23 = vpop.f32.mrf.mxu2 }
 0x1da   : > { %v3266_v42 = vpop.eup %3265  ;;  %3271 = vrcp.f32 %v5433_v13  ;;  %v2727_v24 = vmul.f32 -1.442695, %v5417_v32  ;;  %vm2102_vm11 = vcmp.eq.f32.partialorder %v2101_v7, 8.507059e+37  ;;  %v1233_v40 = vmul.f32 %v1116_v1, %v5132_v9 }
 0x1db   : > { %v5448_v55 = vpop.eup %3267  ;;  %vm2112_vm12 = vweird.f32 %v5304_v6  ;;  %v5452_v56 = vadd.f32 1.0, %v3266_v42  ;;  %1421 = vst [vmem:[%s4884_s28 + $0x40] sm:$0xff] %v1354_v47  ;;  %v1232_v26 = vmul.f32 %v1101_v43, %v5099_v30  ;;  %v2105_v38 = vsel %vm2102_vm11, %v2104_v10, %v2100_v16 }
 0x1dc   : > { %v2118_v51 = vand.u32 2147483648, %v5304_v6  ;;  %3273 = vpow2.f32 %v2822_v17  ;;  %v2111_v14 = vadd.f32 %v5362_v28, %v2110_v44  ;;  %vm2113_vm13 = vweird.f32 %v5362_v28 }
 0x1dd   : > { %vm5459_vm14 = vcmp.eq.f32.partialorder %v2116_v18, 8.507059e+37  ;;  %3275 = vrcp.f32 %v5452_v56  ;;  %v3270_v9 = vpop.eup %3269  ;;  %v1121_v2 = vmul.f32 %v5409_v45, %v1120_v62  ;;  %v1127_v30 = vand.u32 2147483647, %v5351_v58  ;;  %vm5476_vm15 = vmor %vm2112_vm12, %vm2113_vm13 }
 0x1de   : > { %v2123_v48 = vmul.f32 %v5448_v55, %v5390_v12  ;;  %3277 = vpow2.f32 %v2727_v24  ;;  %v1129_v37 = vand.u32 2147483648, %v5351_v58  ;;  %v5469_v59 = vadd.f32 1.0, %v3270_v9  ;;  %v5472_v60 = vpop.f32.mrf.mxu3 }
 0x1df   : > { %v1252_v52 = vpack.c.bf16 %v1233_v40, %v1232_v26  ;;  %v2357_v22 = vadd.f32 %v4958_v8, %v2356_v25  ;;  %v2119_v4 = vor.u32 1.1754944e-38, %v2118_v51  ;;  %vm1123_vm0 = vweird.f32 %v5351_v58  ;;  %v5483_v15 = vpop.f32.mrf.mxu1 }
 0x1e0   : > { %v3272_v21 = vpop.eup %3271  ;;  %vm1124_vm1 = vweird.f32 %v5409_v45  ;;  %v2133_v3 = vand.u32 2147483648, %v5390_v12  ;;  %v5486_v54 = vmul.f32 %v2105_v38, %v5116_v36  ;;  %v2115_v6 = vsel %vm5476_vm15, %v5362_v28, %v2111_v14  ;;  %v5587_v28 = vld [vmem:[%s5909_s4] ss:$0 sm:$0xff] }
 0x1e1   : > { %v1134_v31 = vmul.f32 %v3272_v21, %v5433_v13  ;;  %3279 = vrcp.f32 %v5469_v59  ;;  %1392 = vmatmul.bf16.gmra.mxu1 %v1252_v52  ;;  %2866 = vst [vmem:[%s4884_s28 + $0x138] sm:$0xff] %v2357_v22  ;;  %v1122_v49 = vadd.f32 %v5409_v45, %v1121_v2  ;;  %vm5495_vm2 = vcmp.eq.f32.partialorder %v1127_v30, 8.507059e+37  ;;  %vm5506_vm3 = vmor %vm1123_vm0, %vm1124_vm1  ;;  %v1599_v40 = vpop.f32.mrf.mxu2 }
 0x1e2   : > { %v3274_v41 = vpop.eup %3273  ;;  %v2124_v35 = vsub.f32 1.0, %v2123_v48  ;;  %v1144_v36 = vand.u32 2147483648, %v5433_v13  ;;  %v1130_v7 = vor.u32 1.1754944e-38, %v1129_v37  ;;  %v2131_v57 = vand.u32 2147483647, %v5390_v12 }
 0x1e3   : > { %v5500_v43 = vpop.eup %3275  ;;  %v1135_v25 = vsub.f32 1.0, %v1134_v31  ;;  %v5512_v63 = vadd.f32 %v5174_v20, %v1596_v23  ;;  %v2120_v17 = vsel %vm5459_vm14, %v2119_v4, %v2115_v6  ;;  %vm2127_vm4 = vweird.f32 %v5390_v12 }
 0x1e4   : > { %v3278_v1 = vpop.eup %3277  ;;  %v5517_v16 = vor.u32 1.1754944e-38, %v2133_v3  ;;  %v2138_v58 = vmul.f32 %v5500_v43, %v5452_v56  ;;  %v5521_v44 = vadd.f32 1.0, %v3274_v41  ;;  %vm1138_vm5 = vweird.f32 %v5433_v13  ;;  %v597_v41 = vpop.f32.mrf.mxu0 }
 0x1e5   : > { %v1136_v18 = vmul.f32 %v3272_v21, %v1135_v25  ;;  %vm1139_vm6 = vweird.f32 %v3272_v21  ;;  %v1142_v47 = vand.u32 2147483647, %v5433_v13  ;;  %v1126_v42 = vsel %vm5506_vm3, %v5409_v45, %v1122_v49 }
 0x1e6   : > { %v2125_v10 = vmul.f32 %v5448_v55, %v2124_v35  ;;  %v1145_v62 = vor.u32 1.1754944e-38, %v1144_v36  ;;  %v2139_v24 = vsub.f32 1.0, %v2138_v58  ;;  %v5531_v51 = vadd.f32 1.0, %v3278_v1  ;;  %v5537_v13 = vpop.f32.mrf.mxu3  ;;  %vm1140_vm7 = vmor %vm1138_vm5, %vm1139_vm6 }
 0x1e7   : > { %v5529_v26 = vpop.eup %3279  ;;  %v1137_v38 = vadd.f32 %v3272_v21, %v1136_v18  ;;  %v2823_v23 = vmul.f32 -1.442695, %v5512_v63  ;;  %v5535_v14 = vadd.f32 %v5129_v53, %v595_v33  ;;  %v2146_v45 = vand.u32 2147483647, %v5452_v56  ;;  %v5544_v2 = vpop.f32.mrf.mxu1 }
 0x1e8   : > { %v2148_v50 = vand.u32 2147483648, %v5452_v56  ;;  %v1149_v9 = vmul.f32 %v5529_v26, %v5469_v59  ;;  %3281 = vrcp.f32 %v5521_v44  ;;  %v1131_v30 = vsel %vm5495_vm2, %v1130_v7, %v1126_v42 }
 0x1e9   : > { %v1141_v48 = vsel %vm1140_vm7, %v3272_v21, %v1137_v38  ;;  %v2140_v37 = vmul.f32 %v5500_v43, %v2139_v24  ;;  %3283 = vrcp.f32 %v5531_v51  ;;  %v2237_v52 = vmul.f32 %v2120_v17, %v5177_v0  ;;  %v1601_v58 = vpop.f32.mrf.mxu2 }
 0x1ea   : > { %v5552_v22 = vadd.f32 %v5448_v55, %v2125_v10  ;;  %vm2128_vm8 = vweird.f32 %v5448_v55  ;;  %vm1143_vm9 = vcmp.eq.f32.partialorder %v1142_v47, 8.507059e+37  ;;  %vm2142_vm10 = vweird.f32 %v5452_v56 }
 0x1eb   : > { %v1146_v39 = vsel %vm1143_vm9, %v1145_v62, %v1141_v48  ;;  %3285 = vpow2.f32 %v2823_v23  ;;  %v2728_v4 = vmul.f32 -1.442695, %v5535_v14  ;;  %v1234_v21 = vmul.f32 %v1131_v30, %v5225_v11  ;;  %vm5565_vm12 = vmor %vm2127_vm4, %vm2128_vm8 }
 0x1ec   : > { %vm5558_vm11 = vcmp.eq.f32.partialorder %v2146_v45, 8.507059e+37  ;;  %v2149_v6 = vor.u32 1.1754944e-38, %v2148_v50  ;;  %v1150_v0 = vsub.f32 1.0, %v1149_v9  ;;  %v1157_v31 = vand.u32 2147483647, %v5469_v59 }
 0x1ed   : > { %v2141_v27 = vadd.f32 %v5500_v43, %v2140_v37  ;;  %vm2143_vm13 = vweird.f32 %v5500_v43  ;;  %vm1153_vm14 = vweird.f32 %v5469_v59  ;;  %3287 = vpow2.f32 %v2728_v4 }
 0x1ee   : > { %v5572_v11 = vpop.eup %3281  ;;  %v2130_v35 = vsel %vm5565_vm12, %v5448_v55, %v5552_v22  ;;  %vm5578_vm15 = vcmp.eq.f32.partialorder %v2131_v57, 8.507059e+37  ;;  %v1235_v36 = vmul.f32 %v1146_v39, %v5341_v5  ;;  %v1159_v33 = vand.u32 2147483648, %v5469_v59  ;;  %v2364_v17 = vpop.f32.mrf.mxu3  ;;  %vm5606_vm0 = vmor %vm2142_vm10, %vm2143_vm13 }
 0x1ef   : > { %v1356_v7 = vadd.f32 %v5587_v28, %v5436_v19  ;;  %v5591_v25 = vpop.eup %3283  ;;  %v2256_v55 = vpack.c.bf16 %v2237_v52, %v5486_v54  ;;  %v2360_v57 = vadd.f32 %v4958_v8, %v5472_v60  ;;  %v5597_v5 = vadd.f32 %v5174_v20, %v1599_v40  ;;  %v1363_v18 = vpop.f32.mrf.mxu1 }
 0x1f0   : > { %v5600_v1 = vadd.f32 %v5129_v53, %v597_v41  ;;  %v1151_v54 = vmul.f32 %v5529_v26, %v1150_v0  ;;  %vm1154_vm1 = vweird.f32 %v5529_v26  ;;  %vm5612_vm2 = vcmp.eq.f32.partialorder %v1157_v31, 8.507059e+37 }
 0x1f1   : > { %v1164_v53 = vmul.f32 %v5591_v25, %v5531_v51  ;;  %1422 = vst [vmem:[%s4884_s28 + $0x48] sm:$0xff] %v1356_v7  ;;  %v3286_v56 = vpop.eup %3285  ;;  %v2145_v47 = vsel %vm5606_vm0, %v5500_v43, %v2141_v27  ;;  %v1174_v42 = vand.u32 2147483648, %v5531_v51  ;;  %2398 = vmatmul.bf16.gmra.mxu3 %v2256_v55  ;;  %v2824_v10 = vmul.f32 -1.442695, %v5597_v5  ;;  %vm5648_vm4 = vmor %vm1153_vm14, %vm1154_vm1 }
 0x1f2   : > { %2867 = vst [vmem:[%s4884_s28 + $0x140] sm:$0xff] %v2360_v57  ;;  %v1359_v62 = vadd.f32 %v5587_v28, %v5483_v15  ;;  %v2153_v24 = vmul.f32 %v5572_v11, %v5521_v44  ;;  %v5629_v38 = vadd.f32 1.0, %v3286_v56  ;;  %v2729_v23 = vmul.f32 -1.442695, %v5600_v1 }
 0x1f3   : > { %v1165_v40 = vsub.f32 1.0, %v1164_v53  ;;  %v3288_v45 = vpop.eup %3287  ;;  %3289 = vpow2.f32 %v2824_v10  ;;  %v1253_v43 = vpack.c.bf16 %v1235_v36, %v1234_v21  ;;  %v2362_v50 = vadd.f32 %v4958_v8, %v5537_v13 }
 0x1f4   : > { %1423 = vst [vmem:[%s4884_s28 + $0x50] sm:$0xff] %v1359_v62  ;;  %v5636_v9 = vadd.f32 %v5174_v20, %v1601_v58  ;;  %v1152_v15 = vadd.f32 %v5529_v26, %v1151_v54  ;;  %vm1169_vm3 = vweird.f32 %v5591_v25  ;;  %3291 = vrcp.f32 %v5629_v38 }
 0x1f5   : > { %v1166_v30 = vmul.f32 %v5591_v25, %v1165_v40  ;;  %v2150_v48 = vsel %vm5558_vm11, %v2149_v6, %v2145_v47  ;;  %vm1168_vm5 = vweird.f32 %v5531_v51  ;;  %v1172_v20 = vand.u32 2147483647, %v5531_v51  ;;  %1397 = vmatmul.bf16.gmra.mxu1 %v1253_v43  ;;  %2868 = vst [vmem:[%s4884_s28 + $0x148] sm:$0xff] %v2362_v50 }
 0x1f6   : > { %v5654_v37 = vadd.f32 1.0, %v3288_v45  ;;  %v2154_v52 = vsub.f32 1.0, %v2153_v24  ;;  %3293 = vpow2.f32 %v2729_v23  ;;  %v2825_v39 = vmul.f32 -1.442695, %v5636_v9  ;;  %vm5664_vm6 = vmor %vm1168_vm5, %vm1169_vm3  ;;  %v2366_v3 = vpop.f32.mrf.mxu3 }
 0x1f7   : > { %v1167_v22 = vadd.f32 %v5591_v25, %v1166_v30  ;;  %v2135_v59 = vsel %vm5578_vm15, %v5517_v16, %v2130_v35  ;;  %v1160_v4 = vor.u32 1.1754944e-38, %v1159_v33  ;;  %v1175_v51 = vor.u32 1.1754944e-38, %v1174_v42  ;;  %v1365_v31 = vpop.f32.mrf.mxu1 }
 0x1f8   : > { %3295 = vrcp.f32 %v5654_v37  ;;  %v2239_v6 = vmul.f32 %v2150_v48, %v5360_v46  ;;  %v1156_v0 = vsel %vm5648_vm4, %v5529_v26, %v1152_v15  ;;  %vm1173_vm7 = vcmp.eq.f32.partialorder %v1172_v20, 8.507059e+37 }
 0x1f9   : > { %v1171_v16 = vsel %vm5664_vm6, %v5591_v25, %v1167_v22  ;;  %3297 = vpow2.f32 %v2825_v39  ;;  %v3290_v41 = vpop.eup %3289  ;;  %v1361_v49 = vadd.f32 %v5587_v28, %v5544_v2  ;;  %v2365_v27 = vadd.f32 %v4958_v8, %v2364_v17  ;;  %v5694_v2 = vld [vmem:[%s5909_s4 + $0x1] ss:$0 sm:$0xff] }
 0x1fa   : > { %v5679_v35 = vpop.eup %3291  ;;  %v2238_v46 = vmul.f32 %v2135_v59, %v5287_v29  ;;  %v2155_v26 = vmul.f32 %v5572_v11, %v2154_v52  ;;  %v1176_v12 = vsel %vm1173_vm7, %v1175_v51, %v1171_v16  ;;  %v5683_v36 = vadd.f32 1.0, %v3290_v41 }
 0x1fb   : > { %v1161_v33 = vsel %vm5612_vm2, %v1160_v4, %v1156_v0  ;;  %v2168_v7 = vmul.f32 %v5679_v35, %v5629_v38  ;;  %1424 = vst [vmem:[%s4884_s28 + $0x58] sm:$0xff] %v1361_v49  ;;  %v1364_v8 = vadd.f32 %v5587_v28, %v1363_v18  ;;  %v2367_v29 = vadd.f32 %v5694_v2, %v2366_v3 }
 0x1fc   : > { %v3294_v25 = vpop.eup %3293  ;;  %vm2157_vm8 = vweird.f32 %v5521_v44  ;;  %v2163_v55 = vand.u32 2147483648, %v5521_v44  ;;  %3299 = vrcp.f32 %v5683_v36  ;;  %v2257_v57 = vpack.c.bf16 %v2239_v6, %v2238_v46  ;;  %2869 = vst [vmem:[%s4884_s28 + $0x150] sm:$0xff] %v2365_v27 }
 0x1fd   : > { %v1237_v19 = vmul.f32 %v1176_v12, %v5417_v32  ;;  %v2169_v54 = vsub.f32 1.0, %v2168_v7  ;;  %v5704_v60 = vadd.f32 1.0, %v3294_v25  ;;  %1425 = vst [vmem:[%s4884_s28 + $0x60] sm:$0xff] %v1364_v8  ;;  %v1366_v53 = vadd.f32 %v5587_v28, %v1365_v31 }
 0x1fe   : > { %v5701_v17 = vpop.eup %3295  ;;  %v1236_v18 = vmul.f32 %v1161_v33, %v5393_v34  ;;  %v2156_v56 = vadd.f32 %v5572_v11, %v2155_v26  ;;  %vm2158_vm9 = vweird.f32 %v5572_v11  ;;  %2870 = vst [vmem:[%s4884_s28 + $0x158] sm:$0xff] %v2367_v29  ;;  %vm2172_vm10 = vweird.f32 %v5629_v38  ;;  %v2369_v32 = vpop.f32.mrf.mxu3 }
 0x1ff   : > { %v3298_v58 = vpop.eup %3297  ;;  %v1179_v47 = vmul.f32 %v5701_v17, %v5654_v37  ;;  %v2170_v42 = vmul.f32 %v5679_v35, %v2169_v54  ;;  %vm2173_vm11 = vweird.f32 %v5679_v35  ;;  %3301 = vrcp.f32 %v5704_v60  ;;  %1426 = vst [vmem:[%s4884_s28 + $0x68] sm:$0xff] %v1366_v53  ;;  %v1368_v40 = vpop.f32.mrf.mxu1  ;;  %vm5725_vm12 = vmor %vm2157_vm8, %vm2158_vm9 }
 0x200   : > { %v2178_v34 = vand.u32 2147483648, %v5629_v38  ;;  %v5720_v62 = vadd.f32 1.0, %v3298_v58  ;;  %v2370_v24 = vadd.f32 %v5694_v2, %v2369_v32  ;;  %v2176_v43 = vand.u32 2147483647, %v5629_v38  ;;  %vm5739_vm13 = vmor %vm2172_vm10, %vm2173_vm11 }
 0x201   : > { %v1180_v10 = vsub.f32 1.0, %v1179_v47  ;;  %v2171_v45 = vadd.f32 %v5679_v35, %v2170_v42  ;;  %2403 = vmatmul.bf16.gmra.mxu3 %v2257_v57  ;;  %v1254_v50 = vpack.c.bf16 %v1237_v19, %v1236_v18  ;;  %v1369_v15 = vadd.f32 %v5587_v28, %v1368_v40 }
 0x202   : > { %v5732_v30 = vpop.eup %3299  ;;  %v2161_v48 = vand.u32 2147483647, %v5521_v44  ;;  %3303 = vrcp.f32 %v5720_v62  ;;  %2871 = vst [vmem:[%s4884_s28 + $0x160] sm:$0xff] %v2370_v24  ;;  %v2160_v52 = vsel %vm5725_vm12, %v5572_v11, %v2156_v56  ;;  %v1187_v22 = vand.u32 2147483647, %v5654_v37 }
 0x203   : > { %v1181_v20 = vmul.f32 %v5701_v17, %v1180_v10  ;;  %v2175_v44 = vsel %vm5739_vm13, %v5679_v35, %v2171_v45  ;;  %1427 = vst [vmem:[%s4884_s28 + $0x70] sm:$0xff] %v1369_v15  ;;  %v2179_v38 = vor.u32 1.1754944e-38, %v2178_v34  ;;  %vm1183_vm14 = vweird.f32 %v5654_v37 }
 0x204   : > { %vm1184_vm15 = vweird.f32 %v5701_v17  ;;  %v1189_v39 = vand.u32 2147483648, %v5654_v37  ;;  %v2164_v4 = vor.u32 1.1754944e-38, %v2163_v55  ;;  %vm2177_vm0 = vcmp.eq.f32.partialorder %v2176_v43, 8.507059e+37 }
 0x205   : > { %v3302_v59 = vpop.eup %3301  ;;  %v2183_v11 = vmul.f32 %v5732_v30, %v5683_v36  ;;  %1402 = vmatmul.bf16.gmra.mxu1 %v1254_v50  ;;  %vm2162_vm1 = vcmp.eq.f32.partialorder %v2161_v48, 8.507059e+37  ;;  %v2180_v21 = vsel %vm2177_vm0, %v2179_v38, %v2175_v44  ;;  %v1182_v51 = vadd.f32 %v5701_v17, %v1181_v20  ;;  %vm5761_vm2 = vmor %vm1183_vm14, %vm1184_vm15 }
 0x206   : > { %v1194_v3 = vmul.f32 %v3302_v59, %v5704_v60  ;;  %v2165_v6 = vsel %vm2162_vm1, %v2164_v4, %v2160_v52  ;;  %vm5765_vm3 = vcmp.eq.f32.partialorder %v1187_v22, 8.507059e+37  ;;  %v2371_v16 = vpop.f32.mrf.mxu3  ;;  %v1190_v41 = vor.u32 1.1754944e-38, %v1189_v39 }
 0x207   : > { %v1204_v27 = vand.u32 2147483648, %v5704_v60  ;;  %v2372_v35 = vadd.f32 %v5694_v2, %v2371_v16  ;;  %v1370_v46 = vpop.f32.mrf.mxu1  ;;  %v2241_v26 = vmul.f32 %v2180_v21, %v5512_v63  ;;  %v2184_v12 = vsub.f32 1.0, %v2183_v11 }
 0x208   : > { %v3304_v31 = vpop.eup %3303  ;;  %v1195_v49 = vsub.f32 1.0, %v1194_v3  ;;  %v1371_v7 = vadd.f32 %v5587_v28, %v1370_v46  ;;  %v1186_v8 = vsel %vm5761_vm2, %v5701_v17, %v1182_v51  ;;  %vm1199_vm4 = vweird.f32 %v3302_v59 }
 0x209   : > { %v2198_v33 = vmul.f32 %v3304_v31, %v5720_v62  ;;  %v1202_v25 = vand.u32 2147483647, %v5704_v60  ;;  %2872 = vst [vmem:[%s4884_s28 + $0x168] sm:$0xff] %v2372_v35  ;;  %v2240_v55 = vmul.f32 %v2165_v6, %v5414_v61  ;;  %vm1198_vm5 = vweird.f32 %v5704_v60 }
 0x20a   : > { %v1196_v29 = vmul.f32 %v3302_v59, %v1195_v49  ;;  %1428 = vst [vmem:[%s4884_s28 + $0x78] sm:$0xff] %v1371_v7  ;;  %v1205_v63 = vor.u32 1.1754944e-38, %v1204_v27  ;;  %v1191_v54 = vsel %vm5765_vm3, %v1190_v41, %v1186_v8  ;;  %v2185_v53 = vmul.f32 %v5732_v30, %v2184_v12  ;;  %vm1200_vm6 = vmor %vm1198_vm5, %vm1199_vm4 }
 0x20b   : > { %v2199_v57 = vsub.f32 1.0, %v2198_v33  ;;  %v2258_v58 = vpack.c.bf16 %v2241_v26, %v2240_v55  ;;  %vm1203_vm7 = vcmp.eq.f32.partialorder %v1202_v25, 8.507059e+37  ;;  %vm2202_vm8 = vweird.f32 %v5720_v62 }
 0x20c   : > { %v1197_v19 = vadd.f32 %v3302_v59, %v1196_v29  ;;  %vm2203_vm9 = vweird.f32 %v3304_v31  ;;  %v1238_v60 = vmul.f32 %v1191_v54, %v5535_v14  ;;  %v2208_v32 = vand.u32 2147483648, %v5720_v62 }
 0x20d   : > { %v2200_v17 = vmul.f32 %v3304_v31, %v2199_v57  ;;  %v2186_v24 = vadd.f32 %v5732_v30, %v2185_v53  ;;  %vm2188_vm10 = vweird.f32 %v5732_v30  ;;  %v2206_v40 = vand.u32 2147483647, %v5720_v62  ;;  %vm2204_vm11 = vmor %vm2202_vm8, %vm2203_vm9 }
 0x20e   : > { %v1201_v18 = vsel %vm1200_vm6, %v3302_v59, %v1197_v19  ;;  %v2374_v61 = vpop.f32.mrf.mxu3  ;;  %v2193_v45 = vand.u32 2147483648, %v5683_v36  ;;  %vm2187_vm12 = vweird.f32 %v5683_v36  ;;  %v2209_v50 = vor.u32 1.1754944e-38, %v2208_v32 }
 0x20f   : > { %v1206_v56 = vsel %vm1203_vm7, %v1205_v63, %v1201_v18  ;;  %v2201_v47 = vadd.f32 %v3304_v31, %v2200_v17  ;;  %v2375_v34 = vadd.f32 %v5694_v2, %v2374_v61  ;;  %v1373_v10 = vpop.f32.mrf.mxu1  ;;  %vm2189_vm13 = vmor %vm2187_vm12, %vm2188_vm10  ;;  %vm2207_vm14 = vcmp.eq.f32.partialorder %v2206_v40, 8.507059e+37 }
 0x210   : > { %v1239_v42 = vmul.f32 %v1206_v56, %v5600_v1  ;;  %v1374_v23 = vadd.f32 %v5587_v28, %v1373_v10  ;;  %v2191_v1 = vand.u32 2147483647, %v5683_v36  ;;  %v2190_v62 = vsel %vm2189_vm13, %v5732_v30, %v2186_v24 }
 0x211   : > { %2408 = vmatmul.bf16.gmra.mxu3 %v2258_v58  ;;  %2873 = vst [vmem:[%s4884_s28 + $0x170] sm:$0xff] %v2375_v34  ;;  %v2205_v43 = vsel %vm2204_vm11, %v3304_v31, %v2201_v47  ;;  %v2194_v15 = vor.u32 1.1754944e-38, %v2193_v45 }
 0x212   : > { %v1255_v14 = vpack.c.bf16 %v1239_v42, %v1238_v60  ;;  %1429 = vst [vmem:[%s4884_s28 + $0x80] sm:$0xff] %v1374_v23  ;;  %v2210_v48 = vsel %vm2207_vm14, %v2209_v50, %v2205_v43  ;;  %vm2192_vm15 = vcmp.eq.f32.partialorder %v2191_v1, 8.507059e+37 }
 0x213   : > { %v2195_v20 = vsel %vm2192_vm15, %v2194_v15, %v2190_v62  ;;  %v2243_v44 = vmul.f32 %v2210_v48, %v5636_v9 }
 0x214   : > { %v2242_v30 = vmul.f32 %v2195_v20, %v5597_v5 }
 0x215   : > { %1407 = vmatmul.bf16.gmra.mxu1 %v1255_v14 }
 0x216   : > { %v2376_v13 = vpop.f32.mrf.mxu3  ;;  %v2259_v38 = vpack.c.bf16 %v2243_v44, %v2242_v30 }
 0x217   : > { %v2377_v52 = vadd.f32 %v5694_v2, %v2376_v13  ;;  %v1375_v36 = vpop.f32.mrf.mxu1 }
 0x218   : > { %v1376_v22 = vadd.f32 %v5587_v28, %v1375_v36 }
 0x219   : > { %2874 = vst [vmem:[%s4884_s28 + $0x178] sm:$0xff] %v2377_v52 }
 0x21a   : > { %1430 = vst [vmem:[%s4884_s28 + $0x88] sm:$0xff] %v1376_v22 }
 0x21e   : > { %v2379_v39 = vpop.f32.mrf.mxu3 }
 0x21f   : > { %v2380_v59 = vadd.f32 %v5694_v2, %v2379_v39 }
 0x221   : > { %2413 = vmatmul.bf16.gmra.mxu3 %v2259_v38  ;;  %2875 = vst [vmem:[%s4884_s28 + $0x180] sm:$0xff] %v2380_v59 }
 0x226   : > { %v1378_v4 = vpop.f32.mrf.mxu1  ;;  %v2381_v11 = vpop.f32.mrf.mxu3 }
 0x227   : > { %v1379_v9 = vadd.f32 %v5587_v28, %v1378_v4  ;;  %v2382_v21 = vadd.f32 %v5694_v2, %v2381_v11 }
 0x229   : > { %1431 = vst [vmem:[%s4884_s28 + $0x90] sm:$0xff] %v1379_v9 }
 0x22a   : > { %2876 = vst [vmem:[%s4884_s28 + $0x188] sm:$0xff] %v2382_v21 }
 0x22e   : > { %v1380_v5 = vpop.f32.mrf.mxu1 }
 0x22f   : > { %v1381_v51 = vadd.f32 %v5587_v28, %v1380_v5 }
 0x231   : > { %1432 = vst [vmem:[%s4884_s28 + $0x98] sm:$0xff] %v1381_v51  ;;  %v2384_v3 = vpop.f32.mrf.mxu3 }
 0x232   : > { %v2385_v6 = vadd.f32 %v5694_v2, %v2384_v3 }
 0x234   : > { %2877 = vst [vmem:[%s4884_s28 + $0x190] sm:$0xff] %v2385_v6 }
 0x236   : > { %v1383_v0 = vpop.f32.mrf.mxu1 }
 0x237   : > { %v1384_v37 = vadd.f32 %v5587_v28, %v1383_v0 }
 0x239   : > { %1433 = vst [vmem:[%s4884_s28 + $0xa0] sm:$0xff] %v1384_v37  ;;  %v2386_v16 = vpop.f32.mrf.mxu3 }
 0x23a   : > { %v2387_v31 = vadd.f32 %v5694_v2, %v2386_v16 }
 0x23c   : > { %2878 = vst [vmem:[%s4884_s28 + $0x198] sm:$0xff] %v2387_v31 }
 0x23e   : > { %v1385_v41 = vpop.f32.mrf.mxu1 }
 0x23f   : > { %v1386_v49 = vadd.f32 %v5587_v28, %v1385_v41 }
 0x241   : > { %1434 = vst [vmem:[%s4884_s28 + $0xa8] sm:$0xff] %v1386_v49 }
 0x24b   : > { %v2389_v27 = vpop.f32.mrf.mxu3 }
 0x24c   : > { %v2390_v35 = vadd.f32 %v5694_v2, %v2389_v27 }
 0x24d   : > { %v1388_v46 = vpop.f32.mrf.mxu1 }
 0x24e   : > { %2879 = vst [vmem:[%s4884_s28 + $0x1a0] sm:$0xff] %v2390_v35  ;;  %v1389_v26 = vadd.f32 %v5587_v28, %v1388_v46 }
 0x250   : > { %1435 = vst [vmem:[%s4884_s28 + $0xb0] sm:$0xff] %v1389_v26 }
 0x253   : > { %v2391_v12 = vpop.f32.mrf.mxu3 }
 0x254   : > { %v2392_v33 = vadd.f32 %v5694_v2, %v2391_v12 }
 0x255   : > { %v1390_v7 = vpop.f32.mrf.mxu1 }
 0x256   : > { %2880 = vst [vmem:[%s4884_s28 + $0x1a8] sm:$0xff] %v2392_v33  ;;  %v1391_v8 = vadd.f32 %v5587_v28, %v1390_v7 }
 0x258   : > { %1436 = vst [vmem:[%s4884_s28 + $0xb8] sm:$0xff] %v1391_v8 }
 0x25b   : > { %v2394_v29 = vpop.f32.mrf.mxu3 }
 0x25c   : > { %v2395_v25 = vadd.f32 %v5694_v2, %v2394_v29 }
 0x25e   : > { %v1393_v55 = vpop.f32.mrf.mxu1  ;;  %2881 = vst [vmem:[%s4884_s28 + $0x1b0] sm:$0xff] %v2395_v25 }
 0x25f   : > { %v1394_v57 = vadd.f32 %v5587_v28, %v1393_v55 }
 0x261   : > { %1437 = vst [vmem:[%s4884_s28 + $0xc0] sm:$0xff] %v1394_v57 }
 0x263   : > { %v2396_v19 = vpop.f32.mrf.mxu3 }
 0x264   : > { %v2397_v63 = vadd.f32 %v5694_v2, %v2396_v19 }
 0x266   : > { %v1395_v54 = vpop.f32.mrf.mxu1  ;;  %2882 = vst [vmem:[%s4884_s28 + $0x1b8] sm:$0xff] %v2397_v63 }
 0x267   : > { %v1396_v53 = vadd.f32 %v5587_v28, %v1395_v54 }
 0x269   : > { %1438 = vst [vmem:[%s4884_s28 + $0xc8] sm:$0xff] %v1396_v53 }
 0x272   : > { %v1398_v17 = vpop.f32.mrf.mxu1 }
 0x273   : > { %v1399_v58 = vadd.f32 %v5587_v28, %v1398_v17 }
 0x274   : > { %v2399_v18 = vpop.f32.mrf.mxu3 }
 0x275   : > { %v2400_v56 = vadd.f32 %v5694_v2, %v2399_v18  ;;  %1439 = vst [vmem:[%s4884_s28 + $0xd0] sm:$0xff] %v1399_v58 }
 0x277   : > { %2883 = vst [vmem:[%s4884_s28 + $0x1c0] sm:$0xff] %v2400_v56 }
 0x27a   : > { %v1400_v47 = vpop.f32.mrf.mxu1 }
 0x27b   : > { %v1401_v61 = vadd.f32 %v5587_v28, %v1400_v47 }
 0x27c   : > { %v2401_v60 = vpop.f32.mrf.mxu3 }
 0x27d   : > { %v2402_v42 = vadd.f32 %v5694_v2, %v2401_v60  ;;  %1440 = vst [vmem:[%s4884_s28 + $0xd8] sm:$0xff] %v1401_v61 }
 0x27f   : > { %2884 = vst [vmem:[%s4884_s28 + $0x1c8] sm:$0xff] %v2402_v42 }
 0x282   : > { %v1403_v32 = vpop.f32.mrf.mxu1 }
 0x283   : > { %v1404_v34 = vadd.f32 %v5587_v28, %v1403_v32 }
 0x284   : > { %v2404_v10 = vpop.f32.mrf.mxu3 }
 0x285   : > { %v2405_v24 = vadd.f32 %v5694_v2, %v2404_v10  ;;  %1441 = vst [vmem:[%s4884_s28 + $0xe0] sm:$0xff] %v1404_v34 }
 0x287   : > { %2885 = vst [vmem:[%s4884_s28 + $0x1d0] sm:$0xff] %v2405_v24 }
 0x28a   : > { %v1405_v40 = vpop.f32.mrf.mxu1 }
 0x28b   : > { %v1406_v23 = vadd.f32 %v5587_v28, %v1405_v40 }
 0x28c   : > { %v2406_v45 = vpop.f32.mrf.mxu3 }
 0x28d   : > { %v2407_v14 = vadd.f32 %v5694_v2, %v2406_v45  ;;  %1442 = vst [vmem:[%s4884_s28 + $0xe8] sm:$0xff] %v1406_v23 }
 0x28f   : > { %2886 = vst [vmem:[%s4884_s28 + $0x1d8] sm:$0xff] %v2407_v14 }
 0x292   : > { %v1408_v1 = vpop.f32.mrf.mxu1 }
 0x293   : > { %v1409_v43 = vadd.f32 %v5587_v28, %v1408_v1 }
 0x294   : > { %v2409_v50 = vpop.f32.mrf.mxu3 }
 0x295   : > { %v2410_v62 = vadd.f32 %v5694_v2, %v2409_v50  ;;  %1443 = vst [vmem:[%s4884_s28 + $0xf0] sm:$0xff] %v1409_v43 }
 0x297   : > { %2887 = vst [vmem:[%s4884_s28 + $0x1e0] sm:$0xff] %v2410_v62 }
 0x29a   : > { %v1410_v15 = vpop.f32.mrf.mxu1 }
 0x29b   : > { %v1411_v48 = vadd.f32 %v5587_v28, %v1410_v15 }
 0x29c   : > { %v2411_v13 = vpop.f32.mrf.mxu3 }
 0x29d   : > { %v2412_v20 = vadd.f32 %v5694_v2, %v2411_v13  ;;  %1444 = vst [vmem:[%s4884_s28 + $0xf8] sm:$0xff] %v1411_v48 }
 0x29f   : > { %2888 = vst [vmem:[%s4884_s28 + $0x1e8] sm:$0xff] %v2412_v20 }
 0x2a4   : > { %v2414_v52 = vpop.f32.mrf.mxu3 }
 0x2a5   : > { %v2415_v36 = vadd.f32 %v5694_v2, %v2414_v52 }
 0x2a7   : > { %2889 = vst [vmem:[%s4884_s28 + $0x1f0] sm:$0xff] %v2415_v36 }
 0x2ac   : > { %v2416_v28 = vpop.f32.mrf.mxu3 }
 0x2ad   : > { %v2417_v44 = vadd.f32 %v5694_v2, %v2416_v28 }
 0x2af   : > { %2890 = vst [vmem:[%s4884_s28 + $0x1f8] sm:$0xff] %v2417_v44 }
 0x2b0   : > { %3458 = shalt.err (!%p3455_p0)
}
 0x2b1   : > { %s3530_s7 = smov 128   ;;  %s3531_s28 = smov 8  }
 0x2b2   : > { %2960 = dma.vmem_to_hbm [thread:$0]  (%p3657_p3), %s2468_s17, 8192, %s2470_s24, %s2453_s25, %s3530_s7, %s3530_s7, %s3531_s28  }
 0x2b3 PF: > { %s2484_s11 = sand.u32 1, %s3501_s18   ;;  %p2977_p5 = pnand %p2592_p11, %p3611_p6 }
 0x2b4   : > { %s2485_s1 = scalar_lea.sflag [#allocation4], %s2484_s11 }
 0x2b5   : > { %p2978_p7 = pneg %p2977_p5 }
 0x2b7   : > { %3496 = dma.done.wait (%p2978_p7), %s2485_s1, 8192  }
 0x2b8   : > { %3498 = vsyncadd (%p2978_p7), %s2485_s1, 4294959104  ;;  %s23_s23 = sadd.s32 1, %s3521_s23   ;;  %s6109_s18 = smov %s3505_s19 }
 0x2b9   : > { %p20_p9 = scmp.ge.s32.totalorder %s23_s23, 4   ;;  %s6110_s19 = smov %s3509_s20 }
 0x2ba   : > { %s6111_s20 = smov %s3673_s27  ;;  %s6112_s21 = smov %s3517_s22 }
 0x2bb   : > { %s6113_s22 = smov %s6115_s10  ;;  %22 = sbr.rel (!%p20_p9) target bundleno = 12 (0xc), region = 102 }
 0x2c0   :  { %2491 = vsyncpa [#allocation3], 1 }
 0x2c1   :  { %2493 = vsyncpa [#allocation3 + $0x1], 1 }
 0x2c2   :  { %2494 = vsyncpa [#allocation6], 1 }
 0x2c3   :  { %2495 = vsyncpa [#allocation9], 1 }
 0x2c4   :  { %2496 = vsyncpa [#allocation4], 1 }
 0x2c5   :  { %2498 = vsyncpa [#allocation4 + $0x1], 1 }

</bundles_post_ra>
